<compile_context>
chip_gen: v5e
topology: v5e:2x2
jax: 0.10.0
libtpu: 0.0.40
codegen_flags: <defaults>
</compile_context>

<pallas_src>
import functools

import jax
import jax.numpy as jnp
from jax import lax
from jax.experimental import pallas as pl
from jax.experimental.pallas import tpu as pltpu


# ----------------------------- Pallas kernel --------------------------------
def _ibq_kernel(x_ref, xp_ref, e_ref, q_ref, idx_ref, mask_ref, stats_ref, *,
                inv_temp, num_codes):
    x = x_ref[...]            # (TN, D) f32 tokens (channels-last)
    e = e_ref[...]            # (K, D)  f32 codebook (resident every grid step)

    # logits = x @ E^T — single fused MXU matmul contracting D.
    logits = lax.dot_general(x, e, (((1,), (1,)), ((), ())),
                             preferred_element_type=jnp.float32)   # (TN, K)
    logits = logits * inv_temp

    # Numerically-stable softmax in f32; EUP reciprocal for the denominator.
    row_max = jnp.max(logits, axis=-1, keepdims=True)              # (TN, 1)
    ex = jnp.exp(logits - row_max)
    denom = jnp.sum(ex, axis=-1, keepdims=True)
    soft = ex * pl.reciprocal(denom, approx=True)                  # (TN, K)

    # argmax over codes (first maximal index, matching torch / jnp.argmax).
    k_iota = lax.broadcasted_iota(jnp.int32, logits.shape, 1)      # (TN, K)
    idx = jnp.min(jnp.where(logits == row_max, k_iota, num_codes),
                  axis=-1, keepdims=True)                          # (TN, 1) i32
    idx_ref[...] = idx

    # hard one-hot; quantized = hard @ E — second fused MXU matmul.
    # (combined_onehot = hard - soft.detach() + soft == hard in the forward pass)
    hard = (k_iota == idx).astype(jnp.float32)                     # (TN, K)
    q = jnp.dot(hard, e, preferred_element_type=jnp.float32)       # (TN, D)
    q_ref[...] = q

    # Fused loss partials. The MSE pairs quantized tokens against x under the
    # original module's `quantized.view(x.shape)` reinterpretation, which is
    # exactly xp_ref's (row-major NCHW flat) layout.
    diff = q - xp_ref[...]
    sq_err = jnp.sum(diff * diff)                                  # scalar
    ent = -jnp.sum(soft * jnp.log(soft + 1e-8))                    # scalar

    # Per-tile code-usage partial (1, 1, K) and loss partial (1, 1, 128).
    mask_ref[...] = jnp.max(hard, axis=0, keepdims=True)[None]
    lane = lax.broadcasted_iota(jnp.int32, (1, 128), 1)
    stats_ref[...] = (jnp.where(lane == 0, sq_err, 0.0)
                      + jnp.where(lane == 1, ent, 0.0))[None]


# ------------------------------ Wrapper --------------------------------------
def ibq_quantize(x_nchw, embedding, *, temperature=1.0, beta=0.25,
                 lam_ent=0.1, token_tile=128):
    B, C, H, W = x_nchw.shape
    K, D = embedding.shape
    assert D == C, "embedding_dim must equal the channel dimension"
    N = B * H * W

    x = x_nchw.astype(jnp.float32)
    emb = embedding.astype(jnp.float32)

    # NCHW -> (N, D) channels-last tokens (lane-dense D on the last axis).
    x_tok = jnp.transpose(x, (0, 2, 3, 1)).reshape(N, D)
    # Row-major NCHW flat view paired against quantized tokens for the MSE
    # (matches torch's `quantized.view(x.shape)` element pairing exactly).
    x_pair = x.reshape(N, D)

    tn = token_tile if N % token_tile == 0 else N
    # TODO(synk): pad N to a multiple of the token tile (masking padded rows in
    # the loss partials) instead of falling back to one full-N tile.
    assert tn % 8 == 0 and N % tn == 0
    num_tiles = N // tn

    kernel = functools.partial(_ibq_kernel, inv_temp=1.0 / temperature,
                               num_codes=K)

    q_tok, idx2d, mask_part, stats_part = pl.pallas_call(
        kernel,
        out_shape=(
            jax.ShapeDtypeStruct((N, D), jnp.float32),               # quantized tokens
            jax.ShapeDtypeStruct((N, 1), jnp.int32),                 # indices
            jax.ShapeDtypeStruct((num_tiles, 1, K), jnp.float32),    # usage partials
            jax.ShapeDtypeStruct((num_tiles, 1, 128), jnp.float32),  # loss partials
        ),
        grid_spec=pltpu.PrefetchScalarGridSpec(
            num_scalar_prefetch=0,
            grid=(num_tiles,),
            in_specs=[
                pl.BlockSpec((tn, D), lambda i: (i, 0)),      # x tokens
                pl.BlockSpec((tn, D), lambda i: (i, 0)),      # x (NCHW-flat pairing)
                pl.BlockSpec((K, D), lambda i: (0, 0)),       # codebook (constant)
            ],
            out_specs=[
                pl.BlockSpec((tn, D), lambda i: (i, 0)),
                pl.BlockSpec((tn, 1), lambda i: (i, 0)),
                pl.BlockSpec((1, 1, K), lambda i: (i, 0, 0)),
                pl.BlockSpec((1, 1, 128), lambda i: (i, 0, 0)),
            ],
        ),
        compiler_params=pltpu.CompilerParams(
            dimension_semantics=("parallel",)),
    )(x_tok, x_pair, emb)

    # Faithful to the original module: `.view(x.shape)` with NO permute back.
    quantized = q_tok.reshape(B, C, H, W)
    indices = idx2d.reshape(N)
    used_code_mask = jnp.max(mask_part[:, 0, :], axis=0) > 0.5

    sum_sq = jnp.sum(stats_part[:, 0, 0])
    sum_ent = jnp.sum(stats_part[:, 0, 1])
    mse = sum_sq / (B * C * H * W)
    entropy_loss = sum_ent / N
    # forward value: q_latent_loss + beta * codebook_loss == (1 + beta) * mse
    loss = (1.0 + beta) * mse + lam_ent * entropy_loss
    return quantized, loss, used_code_mask, indices


# --------------------------- Pure-JAX reference -------------------------------
def reference(x, embedding, *, temperature=1.0, beta=0.25, lam_ent=0.1):
    B, C, H, W = x.shape
    K = embedding.shape[0]
    flat_x = jnp.transpose(x, (0, 2, 3, 1)).reshape(-1, C)
    logits = jnp.matmul(flat_x, embedding.T, precision=lax.Precision.HIGHEST)
    soft = jax.nn.softmax(logits / temperature, axis=1)
    indices = jnp.argmax(soft, axis=1)
    hard = jax.nn.one_hot(indices, K, dtype=jnp.float32)
    combined = hard - lax.stop_gradient(soft) + soft
    quantized = jnp.matmul(combined, embedding, precision=lax.Precision.HIGHEST)
    quantized = quantized.reshape(x.shape)   # torch `.view(x.shape)` (no permute back)
    codebook_loss = jnp.mean((quantized - x) ** 2)
    q_latent_loss = jnp.mean((quantized - x) ** 2)
    entropy_loss = jnp.mean(-jnp.sum(soft * jnp.log(soft + 1e-8), axis=1))
    loss = q_latent_loss + beta * codebook_loss + lam_ent * entropy_loss
    used_code_mask = jnp.any(hard > 0.5, axis=0)
    return quantized, loss, used_code_mask, indices


# ----------------------------------- main -------------------------------------
if __name__ == "__main__":
    B, C, H, W = 2, 32, 16, 16          # embedding_dim = C = 32
    emb_size = 256
    temperature, beta, lam_ent = 1.0, 0.25, 0.1

    key = jax.random.PRNGKey(0)
    kx, ke = jax.random.split(key)
    x = jax.random.normal(kx, (B, C, H, W), dtype=jnp.float32)
    embedding = jax.random.uniform(ke, (emb_size, C), dtype=jnp.float32,
                                   minval=-1.0 / emb_size, maxval=1.0 / emb_size)

    quant, loss, used_mask, indices = ibq_quantize(
        x, embedding, temperature=temperature, beta=beta, lam_ent=lam_ent)
    quant = jax.block_until_ready(quant)

    r_quant, r_loss, r_used, r_idx = reference(
        x, embedding, temperature=temperature, beta=beta, lam_ent=lam_ent)

    assert quant.shape == x.shape
    assert jnp.allclose(quant, r_quant, atol=1e-5, rtol=1e-5), \
        f"quantized max abs err {jnp.max(jnp.abs(quant - r_quant))}"
    assert jnp.array_equal(indices, r_idx), "indices mismatch"
    assert jnp.array_equal(used_mask, r_used), "used_code_mask mismatch"
    assert jnp.allclose(loss, r_loss, atol=1e-3, rtol=1e-3), \
        f"loss {loss} vs ref {r_loss}"
    print("KERNEL_OK")
</pallas_src>

<mosaic_0001>
module attributes {stable_mosaic.version = 11 : i64} {
  func.func @_ibq_kernel(%arg0: i32, %arg1: memref<128x32xf32, #tpu.memory_space<vmem>>, %arg2: memref<128x32xf32, #tpu.memory_space<vmem>>, %arg3: memref<256x32xf32, #tpu.memory_space<vmem>>, %arg4: memref<128x32xf32, #tpu.memory_space<vmem>>, %arg5: memref<128x1xi32, #tpu.memory_space<vmem>>, %arg6: memref<1x1x256xf32, #tpu.memory_space<vmem>>, %arg7: memref<1x1x128xf32, #tpu.memory_space<vmem>>) attributes {dimension_semantics = [#tpu.dimension_semantics<parallel>], iteration_bounds = array<i64: 4>, scalar_prefetch = 0 : i64, scratch_operands = 0 : i64, tpu.core_type = #tpu.core_type<tc>, window_params = [{transform_indices = @transform_0, window_bounds = array<i64: 128, 32>}, {transform_indices = @transform_1, window_bounds = array<i64: 128, 32>}, {pipeline_mode = #tpu.pipeline_mode<synchronous>, transform_indices = @transform_2, window_bounds = array<i64: 256, 32>}, {transform_indices = @transform_3, window_bounds = array<i64: 128, 32>}, {transform_indices = @transform_4, window_bounds = array<i64: 128, 1>}, {transform_indices = @transform_5, window_bounds = array<i64: 1, 1, 256>}, {transform_indices = @transform_6, window_bounds = array<i64: 1, 1, 128>}]} {
    %c0 = arith.constant 0 : index
    %c0_0 = arith.constant 0 : index
    %0 = vector.load %arg1[%c0, %c0_0] : memref<128x32xf32, #tpu.memory_space<vmem>>, vector<128x32xf32>
    %c0_1 = arith.constant 0 : index
    %c0_2 = arith.constant 0 : index
    %1 = vector.load %arg3[%c0_1, %c0_2] : memref<256x32xf32, #tpu.memory_space<vmem>>, vector<256x32xf32>
    %cst = arith.constant dense<0.000000e+00> : vector<128x256xf32>
    %2 = tpu.matmul %0, %1, %cst {dimension_numbers = #tpu.dot_dimension_numbers<[1], [1], [0], [0], [0, 0, 1, 0], [], []>} : vector<128x32xf32>, vector<256x32xf32>, vector<128x256xf32> -> vector<128x256xf32>
    %cst_3 = arith.constant 1.000000e+00 : f32
    %3 = vector.broadcast %cst_3 : f32 to vector<128x256xf32>
    %4 = arith.mulf %2, %3 : vector<128x256xf32>
    %cst_4 = arith.constant dense<0xFF800000> : vector<128xf32>
    %5 = vector.multi_reduction <maximumf>, %4, %cst_4 [1] : vector<128x256xf32> to vector<128xf32>
    %6 = vector.shape_cast %5 : vector<128xf32> to vector<128x1xf32>
    %7 = vector.broadcast %6 : vector<128x1xf32> to vector<128x256xf32>
    %8 = arith.subf %4, %7 : vector<128x256xf32>
    %9 = math.exp %8 : vector<128x256xf32>
    %cst_5 = arith.constant dense<0.000000e+00> : vector<128xf32>
    %10 = vector.multi_reduction <add>, %9, %cst_5 [1] : vector<128x256xf32> to vector<128xf32>
    %11 = vector.shape_cast %10 : vector<128xf32> to vector<128x1xf32>
    %12 = tpu.reciprocal %11 {approx = true} : vector<128x1xf32> -> vector<128x1xf32>
    %13 = vector.broadcast %12 : vector<128x1xf32> to vector<128x256xf32>
    %14 = arith.mulf %9, %13 : vector<128x256xf32>
    %15 = tpu.iota {dimensions = array<i32: 1>} : vector<128x256xi32>
    %16 = vector.broadcast %6 : vector<128x1xf32> to vector<128x256xf32>
    %17 = arith.cmpf oeq, %4, %16 : vector<128x256xf32>
    %c256_i32 = arith.constant 256 : i32
    %18 = vector.broadcast %c256_i32 : i32 to vector<128x256xi32>
    %19 = arith.select %17, %15, %18 : vector<128x256xi1>, vector<128x256xi32>
    %cst_6 = arith.constant dense<2147483647> : vector<128xi32>
    %20 = vector.multi_reduction <minsi>, %19, %cst_6 [1] : vector<128x256xi32> to vector<128xi32>
    %21 = vector.shape_cast %20 : vector<128xi32> to vector<128x1xi32>
    %c0_7 = arith.constant 0 : index
    %c0_8 = arith.constant 0 : index
    %22 = vector.load %arg5[%c0_7, %c0_8] : memref<128x1xi32, #tpu.memory_space<vmem>>, vector<128x1xi32>
    tpu.vector_store %arg5[%c0_7, %c0_8], %21 {strides = array<i32>} : memref<128x1xi32, #tpu.memory_space<vmem>>, vector<128x1xi32>,
    %23 = vector.broadcast %21 : vector<128x1xi32> to vector<128x256xi32>
    %24 = arith.cmpi eq, %15, %23 : vector<128x256xi32>
    %25 = arith.extui %24 : vector<128x256xi1> to vector<128x256xi32>
    %26 = arith.sitofp %25 : vector<128x256xi32> to vector<128x256xf32>
    %cst_9 = arith.constant dense<0.000000e+00> : vector<128x32xf32>
    %27 = tpu.matmul %26, %1, %cst_9 {dimension_numbers = #tpu.dot_dimension_numbers<[1], [0], [0], [1], [0, 0, 1, 1], [], []>} : vector<128x256xf32>, vector<256x32xf32>, vector<128x32xf32> -> vector<128x32xf32>
    %c0_10 = arith.constant 0 : index
    %c0_11 = arith.constant 0 : index
    %28 = vector.load %arg4[%c0_10, %c0_11] : memref<128x32xf32, #tpu.memory_space<vmem>>, vector<128x32xf32>
    tpu.vector_store %arg4[%c0_10, %c0_11], %27 {strides = array<i32>} : memref<128x32xf32, #tpu.memory_space<vmem>>, vector<128x32xf32>,
    %c0_12 = arith.constant 0 : index
    %c0_13 = arith.constant 0 : index
    %29 = vector.load %arg2[%c0_12, %c0_13] : memref<128x32xf32, #tpu.memory_space<vmem>>, vector<128x32xf32>
    %30 = arith.subf %27, %29 : vector<128x32xf32>
    %31 = arith.mulf %30, %30 : vector<128x32xf32>
    %32 = vector.shape_cast %31 : vector<128x32xf32> to vector<1x128x32xf32>
    %cst_14 = arith.constant dense<0.000000e+00> : vector<1xf32>
    %33 = vector.multi_reduction <add>, %32, %cst_14 [1, 2] : vector<1x128x32xf32> to vector<1xf32>
    %34 = vector.shape_cast %33 : vector<1xf32> to vector<1x1x1xf32>
    %35 = vector.extract %34[0, 0, 0] : f32 from vector<1x1x1xf32>
    %cst_15 = arith.constant 9.99999993E-9 : f32
    %36 = vector.broadcast %cst_15 : f32 to vector<128x256xf32>
    %37 = arith.addf %14, %36 : vector<128x256xf32>
    %38 = math.log %37 : vector<128x256xf32>
    %39 = arith.mulf %14, %38 : vector<128x256xf32>
    %40 = vector.shape_cast %39 : vector<128x256xf32> to vector<1x128x256xf32>
    %cst_16 = arith.constant dense<0.000000e+00> : vector<1xf32>
    %41 = vector.multi_reduction <add>, %40, %cst_16 [1, 2] : vector<1x128x256xf32> to vector<1xf32>
    %42 = vector.shape_cast %41 : vector<1xf32> to vector<1x1x1xf32>
    %43 = vector.extract %42[0, 0, 0] : f32 from vector<1x1x1xf32>
    %cst_17 = arith.constant 0.000000e+00 : f32
    %44 = arith.subf %cst_17, %43 : f32
    %cst_18 = arith.constant dense<0xFF800000> : vector<256xf32>
    %45 = vector.multi_reduction <maximumf>, %26, %cst_18 [0] : vector<128x256xf32> to vector<256xf32>
    %46 = vector.shape_cast %45 : vector<256xf32> to vector<1x256xf32>
    %47 = vector.shape_cast %46 : vector<1x256xf32> to vector<1x1x256xf32>
    %c0_19 = arith.constant 0 : index
    %c0_20 = arith.constant 0 : index
    %c0_21 = arith.constant 0 : index
    %48 = vector.load %arg6[%c0_19, %c0_20, %c0_21] : memref<1x1x256xf32, #tpu.memory_space<vmem>>, vector<1x1x256xf32>
    tpu.vector_store %arg6[%c0_19, %c0_20, %c0_21], %47 {strides = array<i32>} : memref<1x1x256xf32, #tpu.memory_space<vmem>>, vector<1x1x256xf32>,
    %49 = tpu.iota {dimensions = array<i32: 1>} : vector<1x128xi32>
    %c0_i32 = arith.constant 0 : i32
    %50 = vector.broadcast %c0_i32 : i32 to vector<1x128xi32>
    %51 = arith.cmpi eq, %49, %50 : vector<1x128xi32>
    %cst_22 = arith.constant 0.000000e+00 : f32
    %52 = vector.broadcast %35 : f32 to vector<1x128xf32>
    %53 = vector.broadcast %cst_22 : f32 to vector<1x128xf32>
    %54 = arith.select %51, %52, %53 : vector<1x128xi1>, vector<1x128xf32>
    %c1_i32 = arith.constant 1 : i32
    %55 = vector.broadcast %c1_i32 : i32 to vector<1x128xi32>
    %56 = arith.cmpi eq, %49, %55 : vector<1x128xi32>
    %cst_23 = arith.constant 0.000000e+00 : f32
    %57 = vector.broadcast %44 : f32 to vector<1x128xf32>
    %58 = vector.broadcast %cst_23 : f32 to vector<1x128xf32>
    %59 = arith.select %56, %57, %58 : vector<1x128xi1>, vector<1x128xf32>
    %60 = arith.addf %54, %59 : vector<1x128xf32>
    %61 = vector.shape_cast %60 : vector<1x128xf32> to vector<1x1x128xf32>
    %c0_24 = arith.constant 0 : index
    %c0_25 = arith.constant 0 : index
    %c0_26 = arith.constant 0 : index
    %62 = vector.load %arg7[%c0_24, %c0_25, %c0_26] : memref<1x1x128xf32, #tpu.memory_space<vmem>>, vector<1x1x128xf32>
    tpu.vector_store %arg7[%c0_24, %c0_25, %c0_26], %61 {strides = array<i32>} : memref<1x1x128xf32, #tpu.memory_space<vmem>>, vector<1x1x128xf32>,
    return
  }
  func.func @transform_0(%arg0: i32) -> (i32, i32) {
    %c0_i32 = arith.constant 0 : i32
    %c0_i32_0 = arith.constant 0 : i32
    return %arg0, %c0_i32 : i32, i32
  }
  func.func @transform_1(%arg0: i32) -> (i32, i32) {
    %c0_i32 = arith.constant 0 : i32
    %c0_i32_0 = arith.constant 0 : i32
    return %arg0, %c0_i32 : i32, i32
  }
  func.func @transform_2(%arg0: i32) -> (i32, i32) {
    %c0_i32 = arith.constant 0 : i32
    %c0_i32_0 = arith.constant 0 : i32
    %c0_i32_1 = arith.constant 0 : i32
    return %c0_i32, %c0_i32_0 : i32, i32
  }
  func.func @transform_3(%arg0: i32) -> (i32, i32) {
    %c0_i32 = arith.constant 0 : i32
    %c0_i32_0 = arith.constant 0 : i32
    return %arg0, %c0_i32 : i32, i32
  }
  func.func @transform_4(%arg0: i32) -> (i32, i32) {
    %c0_i32 = arith.constant 0 : i32
    %c0_i32_0 = arith.constant 0 : i32
    return %arg0, %c0_i32 : i32, i32
  }
  func.func @transform_5(%arg0: i32) -> (i32, i32, i32) {
    %c0_i32 = arith.constant 0 : i32
    %c0_i32_0 = arith.constant 0 : i32
    %c0_i32_1 = arith.constant 0 : i32
    return %arg0, %c0_i32, %c0_i32_0 : i32, i32, i32
  }
  func.func @transform_6(%arg0: i32) -> (i32, i32, i32) {
    %c0_i32 = arith.constant 0 : i32
    %c0_i32_0 = arith.constant 0 : i32
    %c0_i32_1 = arith.constant 0 : i32
    return %arg0, %c0_i32, %c0_i32_0 : i32, i32, i32
  }
}

</mosaic_0001>

<bundles_post_ra>
// kernel: tpu_custom_call.1
= control target key start
LH: loop header
LB: loop body
LE: loop exit
PB: predicated region body
PF: predicated region fallthrough
CT: control target
= control target key end

     0   :  { %s3798_s0 = inlined_call_operand.vmem [shape: f32[512,32], index: 0, kind: input, shape index: {}]   ;;  %s3799_s1 = inlined_call_operand.vmem [shape: f32[512,32], index: 1, kind: input, shape index: {}]   ;;  %s3800_s2 = inlined_call_operand.vmem [shape: f32[256,32], index: 2, kind: input, shape index: {}]   ;;  %s3801_s3 = inlined_call_operand.vmem [shape: f32[512,32], index: 3, kind: output, shape index: {0}]   ;;  %s3802_s4 = inlined_call_operand.vmem [shape: s32[512,1], index: 4, kind: output, shape index: {1}]   ;;  %s3803_s5 = inlined_call_operand.hbm [shape: f32[4,1,256], index: 5, kind: output, shape index: {2}]   ;;  %s3804_s6 = inlined_call_operand.hbm [shape: f32[4,1,128], index: 6, kind: output, shape index: {3}]  }
   0x1   :  { %3840 = sst [smem:[#allocation31_spill]] %s3798_s0 }
   0x2   :  { %12 = vsyncpa [#allocation3], 0 }
   0x3   :  { %14 = vsyncpa [#allocation3 + $0x1], 0 }
   0x4   :  { %15 = vsyncpa [#allocation5], 0 }
   0x5   :  { %17 = vsyncpa [#allocation5 + $0x1], 0  ;;  %s2461_s21 = smov 0   ;;  %s2463_s22 = smov 0  }
   0x6   :  { %s2465_s23 = smov 0   ;;  %s2467_s24 = smov 0  }
   0x7 LB: > { %s2482_s25 = sadd.s32 4294967295, %s2422_s24   ;;  %s1973_s26 = sadd.s32 4294967294, %s2422_s24   ;;  %s2422_s24 = sphi %s2467_s24, %s3898_s24   ;;  %s2418_s23 = sphi %s2465_s23, %s3897_s23   ;;  %s2414_s22 = sphi %s2463_s22, %s3896_s22   ;;  %s2410_s21 = sphi %s2461_s21, %s3895_s21  }
   0x8   : > { %s2486_s27 = sadd.s32 1, %s2422_s24   ;;  %s155_s28 = sadd.s32 1, %s2418_s23 }
   0x9   : > { %s152_s29 = ssub.s32 %s2422_s24, %s2486_s27  ;;  %p165_p0 = scmp.ne.s32.totalorder %s2418_s23, %s2414_s22 }
   0xa   : > { %p153_p1 = scmp.eq.s32.totalorder %s152_s29, 0  ;;  %p166_p2 = scmp.eq.s32.totalorder %s2482_s25, 3 }
   0xb   : > { %p171_p3 = scmp.ne.s32.totalorder %s2414_s22, %s2410_s21  ;;  %p172_p4 = scmp.eq.s32.totalorder %s1973_s26, 3 }
   0xc   : > { %s2497_s30 = scalar_select %p153_p1, %s2418_s23, %s155_s28  }
   0xd   : > { %p2499_p5 = por %p166_p2, %p165_p0  ;;  %p2503_p6 = por %p172_p4, %p171_p3 }
   0xe   : > { %p1976_p7 = scmp.ge.s32.totalorder %s2422_s24, 1  ;;  %p237_p8 = scmp.lt.s32.totalorder %s2422_s24, 5 }
  0x10   : > { %p238_p9 = pnand %p1976_p7, %p237_p8 }
  0x12   : > { %241 = sbr.rel (%p238_p9) target bundleno = 1166 (0x48e), region = 32 }
  0x17   : > { %v341_v0 = vld [vmem:[%s3800_s2 + $0x78] sm:$0xff]  ;;  %vm358_vm0 = vcmask 261120   ;;  %v340_v2 = vld [vmem:[%s3800_s2 + $0x70] sm:$0xff]  ;;  %v339_v4 = vld [vmem:[%s3800_s2 + $0x68] sm:$0xff]  ;;  %s1978_s13 = sshll.u32 %s2482_s25, 4  ;;  %s3843_s0 = sld [smem:[#allocation31_spill]] }
  0x18   : > { %v357_v1 = vld [vmem:[%s3800_s2 + $0xf8] sm:$0xff]  ;;  %1986 = vmatpush.xpose.msk.msra.mxu0 %vm358_vm0, %v341_v0  ;;  %v356_v3 = vld [vmem:[%s3800_s2 + $0xf0] sm:$0xff]  ;;  %1309 = vmatpush.msra.mxu2 %v341_v0  ;;  %v355_v5 = vld [vmem:[%s3800_s2 + $0xe8] sm:$0xff]  ;;  %p287_p10 = scmp.lt.s32.totalorder %s1978_s13, 63  ;;  %s3586_s12 = sand.u32 1, %s2414_s22  }
  0x19   : > { %2018 = vmatpush.xpose.msk.msra.mxu1 %vm358_vm0, %v357_v1  ;;  %1374 = vmatpush.msra.mxu3 %v357_v1  ;;  %v338_v6 = vld [vmem:[%s3800_s2 + $0x60] sm:$0xff]  ;;  %v337_v8 = vld [vmem:[%s3800_s2 + $0x58] sm:$0xff]  ;;  %v336_v10 = vld [vmem:[%s3800_s2 + $0x50] sm:$0xff]  ;;  %s2115_s15 = sshll.u32 %s2482_s25, 1  ;;  %s1784_s26 = scalar_lea.sflag [#allocation3], %s3586_s12 }
  0x1a   : > { %1310 = vmatpush.msra.mxu2 %v340_v2  ;;  %v354_v7 = vld [vmem:[%s3800_s2 + $0xe0] sm:$0xff]  ;;  %v353_v9 = vld [vmem:[%s3800_s2 + $0xd8] sm:$0xff]  ;;  %v352_v11 = vld [vmem:[%s3800_s2 + $0xd0] sm:$0xff]  ;;  %s3900_s13 = smov (!%p287_p10, %s1978_s13), 63  ;;  %s1806_s18 = scalar_lea.hbm %s3803_s5, %s2115_s15 }
  0x1b   : > { %1375 = vmatpush.msra.mxu3 %v356_v3  ;;  %v335_v12 = vld [vmem:[%s3800_s2 + $0x48] sm:$0xff]  ;;  %v334_v14 = vld [vmem:[%s3800_s2 + $0x40] sm:$0xff]  ;;  %v333_v16 = vld [vmem:[%s3800_s2 + $0x38] sm:$0xff]  ;;  %s2634_s14 = sshll.u32 %s3900_s13, 3  ;;  %s1977_s13 = sshll.u32 %s3586_s12, 1 }
  0x1c   : > { %1987 = vmatpush.xpose.msk.msra.mxu0 %vm358_vm0, %v340_v2  ;;  %1311 = vmatpush.msra.mxu2 %v339_v4  ;;  %v351_v13 = vld [vmem:[%s3800_s2 + $0xc8] sm:$0xff]  ;;  %v350_v15 = vld [vmem:[%s3800_s2 + $0xc0] sm:$0xff]  ;;  %v349_v17 = vld [vmem:[%s3800_s2 + $0xb8] sm:$0xff]  ;;  %s3051_s20 = scalar_lea.vmem %s3802_s4, %s2634_s14  ;;  %s3332_s29 = scalar_lea.vmem %s3801_s3, %s2634_s14 }
  0x1d   : > { %2019 = vmatpush.xpose.msk.msra.mxu1 %vm358_vm0, %v356_v3  ;;  %1376 = vmatpush.msra.mxu3 %v355_v5  ;;  %v332_v18 = vld [vmem:[%s3800_s2 + $0x30] sm:$0xff]  ;;  %v331_v20 = vld [vmem:[%s3800_s2 + $0x28] sm:$0xff]  ;;  %v330_v22 = vld [vmem:[%s3800_s2 + $0x20] sm:$0xff]  ;;  %s2642_s17 = scalar_lea.vmem %s3843_s0, %s2634_s14  ;;  %s3344_s11 = scalar_lea.vmem %s3799_s1, %s2634_s14 }
  0x1e   : > { %1312 = vmatpush.msra.mxu2 %v338_v6  ;;  %v348_v19 = vld [vmem:[%s3800_s2 + $0xb0] sm:$0xff]  ;;  %v347_v21 = vld [vmem:[%s3800_s2 + $0xa8] sm:$0xff]  ;;  %v346_v23 = vld [vmem:[%s3800_s2 + $0xa0] sm:$0xff]  ;;  %s3624_s14 = scalar_lea.vmem [#allocation2], %s1977_s13 }
  0x1f   : > { %1377 = vmatpush.msra.mxu3 %v354_v7  ;;  %v329_v24 = vld [vmem:[%s3800_s2 + $0x18] sm:$0xff]  ;;  %v328_v26 = vld [vmem:[%s3800_s2 + $0x10] sm:$0xff]  ;;  %v327_v28 = vld [vmem:[%s3800_s2 + $0x8] sm:$0xff]  ;;  %s1808_s19 = sshll.u32 %s3624_s14, 4  ;;  %s1809_s19 = int_to_ptr.vmem [resolvable:$true] %s1808_s19 }
  0x20   : > { %1988 = vmatpush.xpose.msk.msra.mxu0 %vm358_vm0, %v339_v4  ;;  %1313 = vmatpush.msra.mxu2 %v337_v8  ;;  %v345_v25 = vld [vmem:[%s3800_s2 + $0x98] sm:$0xff]  ;;  %v344_v27 = vld [vmem:[%s3800_s2 + $0x90] sm:$0xff]  ;;  %v343_v29 = vld [vmem:[%s3800_s2 + $0x88] sm:$0xff] }
  0x21   : > { %2020 = vmatpush.xpose.msk.msra.mxu1 %vm358_vm0, %v355_v5  ;;  %1378 = vmatpush.msra.mxu3 %v353_v9  ;;  %v326_v30 = vld [vmem:[%s3800_s2] sm:$0xff]  ;;  %v311_v33 = vld [vmem:[%s2642_s17 + $0x8] sm:$0xff]  ;;  %v312_v34 = vld [vmem:[%s2642_s17 + $0x10] sm:$0xff] }
  0x22   : > { %1314 = vmatpush.msra.mxu2 %v336_v10  ;;  %v342_v31 = vld [vmem:[%s3800_s2 + $0x80] sm:$0xff]  ;;  %v313_v35 = vld [vmem:[%s2642_s17 + $0x18] sm:$0xff]  ;;  %v315_v37 = vld [vmem:[%s2642_s17 + $0x28] sm:$0xff] }
  0x23   : > { %1379 = vmatpush.msra.mxu3 %v352_v11  ;;  %v310_v32 = vld [vmem:[%s2642_s17] sm:$0xff]  ;;  %v316_v38 = vld [vmem:[%s2642_s17 + $0x30] sm:$0xff]  ;;  %v317_v39 = vld [vmem:[%s2642_s17 + $0x38] sm:$0xff] }
  0x24   : > { %1989 = vmatpush.xpose.msk.msra.mxu0 %vm358_vm0, %v338_v6  ;;  %1315 = vmatpush.msra.mxu2 %v335_v12  ;;  %v314_v36 = vld [vmem:[%s2642_s17 + $0x20] sm:$0xff]  ;;  %v319_v41 = vld [vmem:[%s2642_s17 + $0x48] sm:$0xff]  ;;  %v320_v42 = vld [vmem:[%s2642_s17 + $0x50] sm:$0xff] }
  0x25   : > { %2021 = vmatpush.xpose.msk.msra.mxu1 %vm358_vm0, %v354_v7  ;;  %1380 = vmatpush.msra.mxu3 %v351_v13  ;;  %v318_v40 = vld [vmem:[%s2642_s17 + $0x40] sm:$0xff]  ;;  %v321_v43 = vld [vmem:[%s2642_s17 + $0x58] sm:$0xff]  ;;  %v323_v51 = vld [vmem:[%s2642_s17 + $0x68] sm:$0xff] }
  0x26   : > { %1316 = vmatpush.msra.mxu2 %v334_v14  ;;  %v322_v47 = vld [vmem:[%s2642_s17 + $0x60] sm:$0xff]  ;;  %v324_v55 = vld [vmem:[%s2642_s17 + $0x70] sm:$0xff]  ;;  %v325_v59 = vld [vmem:[%s2642_s17 + $0x78] sm:$0xff] }
  0x27   : > { %1381 = vmatpush.msra.mxu3 %v350_v15 }
  0x28   : > { %1990 = vmatpush.xpose.msk.msra.mxu0 %vm358_vm0, %v337_v8  ;;  %1317 = vmatpush.msra.mxu2 %v333_v16  ;;  %v3805_v8 = vlaneseq }
  0x29   : > { %2022 = vmatpush.xpose.msk.msra.mxu1 %vm358_vm0, %v353_v9  ;;  %1382 = vmatpush.msra.mxu3 %v349_v17 }
  0x2a   : > { %1318 = vmatpush.msra.mxu2 %v332_v18  ;;  %v2743_v9 = vand.u32 127, %v3805_v8 }
  0x2b   : > { %1383 = vmatpush.msra.mxu3 %v348_v19 }
  0x2c   : > { %1991 = vmatpush.xpose.msk.msra.mxu0 %vm358_vm0, %v336_v10  ;;  %1319 = vmatpush.msra.mxu2 %v331_v20 }
  0x2d   : > { %2023 = vmatpush.xpose.msk.msra.mxu1 %vm358_vm0, %v352_v11  ;;  %1384 = vmatpush.msra.mxu3 %v347_v21 }
  0x2e   : > { %1320 = vmatpush.msra.mxu2 %v330_v22 }
  0x2f   : > { %1385 = vmatpush.msra.mxu3 %v346_v23 }
  0x30   : > { %1992 = vmatpush.xpose.msk.msra.mxu0 %vm358_vm0, %v335_v12  ;;  %1321 = vmatpush.msra.mxu2 %v329_v24  ;;  %v2750_v12 = vadd.s32 128, %v2743_v9 }
  0x31   : > { %2024 = vmatpush.xpose.msk.msra.mxu1 %vm358_vm0, %v351_v13  ;;  %1386 = vmatpush.msra.mxu3 %v345_v25 }
  0x32   : > { %1322 = vmatpush.msra.mxu2 %v328_v26 }
  0x33   : > { %1387 = vmatpush.msra.mxu3 %v344_v27 }
  0x34   : > { %1993 = vmatpush.xpose.msk.msra.mxu0 %vm358_vm0, %v334_v14  ;;  %1323 = vmatpush.msra.mxu2 %v327_v28 }
  0x35   : > { %2025 = vmatpush.xpose.msk.msra.mxu1 %vm358_vm0, %v350_v15  ;;  %1388 = vmatpush.msra.mxu3 %v343_v29 }
  0x36   : > { %1324 = vmatpush.msra.mxu2 %v326_v30 }
  0x37   : > { %1389 = vmatpush.msra.mxu3 %v342_v31 }
  0x38   : > { %1994 = vmatpush.xpose.msk.msra.mxu0 %vm358_vm0, %v333_v16 }
  0x39   : > { %2026 = vmatpush.xpose.msk.msra.mxu1 %vm358_vm0, %v349_v17 }
  0x3c   : > { %1995 = vmatpush.xpose.msk.msra.mxu0 %vm358_vm0, %v332_v18 }
  0x3d   : > { %2027 = vmatpush.xpose.msk.msra.mxu1 %vm358_vm0, %v348_v19 }
  0x40   : > { %1996 = vmatpush.xpose.msk.msra.mxu0 %vm358_vm0, %v331_v20 }
  0x41   : > { %2028 = vmatpush.xpose.msk.msra.mxu1 %vm358_vm0, %v347_v21 }
  0x44   : > { %1997 = vmatpush.xpose.msk.msra.mxu0 %vm358_vm0, %v330_v22 }
  0x45   : > { %2029 = vmatpush.xpose.msk.msra.mxu1 %vm358_vm0, %v346_v23 }
  0x48   : > { %1998 = vmatpush.xpose.msk.msra.mxu0 %vm358_vm0, %v329_v24 }
  0x49   : > { %2030 = vmatpush.xpose.msk.msra.mxu1 %vm358_vm0, %v345_v25 }
  0x4c   : > { %1999 = vmatpush.xpose.msk.msra.mxu0 %vm358_vm0, %v328_v26 }
  0x4d   : > { %2031 = vmatpush.xpose.msk.msra.mxu1 %vm358_vm0, %v344_v27 }
  0x50   : > { %2000 = vmatpush.xpose.msk.msra.mxu0 %vm358_vm0, %v327_v28 }
  0x51   : > { %2032 = vmatpush.xpose.msk.msra.mxu1 %vm358_vm0, %v343_v29 }
  0x54   : > { %2001 = vmatpush.xpose.msk.msra.mxu0 %vm358_vm0, %v326_v30 }
  0x55   : > { %2033 = vmatpush.xpose.msk.msra.mxu1 %vm358_vm0, %v342_v31 }
  0x57   : > { %2002 = vmatmul.msk.f32.vlgmr.msra.gmra.mxu0 %vm358_vm0, %v310_v32 }
  0x58   : > { %2034 = vmatmul.msk.f32.vlgmr.msra.gmra.mxu1 %vm358_vm0, %v310_v32 }
  0x5f   : > { %2003 = vmatmul.msk.f32.gmra.mxu0 %vm358_vm0, %v311_v33 }
  0x60   : > { %2035 = vmatmul.msk.f32.gmra.mxu1 %vm358_vm0, %v311_v33 }
  0x67   : > { %2004 = vmatmul.msk.f32.gmra.mxu0 %vm358_vm0, %v312_v34 }
  0x68   : > { %2036 = vmatmul.msk.f32.gmra.mxu1 %vm358_vm0, %v312_v34 }
  0x6f   : > { %2005 = vmatmul.msk.f32.gmra.mxu0 %vm358_vm0, %v313_v35 }
  0x70   : > { %2037 = vmatmul.msk.f32.gmra.mxu1 %vm358_vm0, %v313_v35 }
  0x77   : > { %2006 = vmatmul.msk.f32.gmra.mxu0 %vm358_vm0, %v314_v36 }
  0x78   : > { %2038 = vmatmul.msk.f32.gmra.mxu1 %vm358_vm0, %v314_v36 }
  0x7f   : > { %2007 = vmatmul.msk.f32.gmra.mxu0 %vm358_vm0, %v315_v37 }
  0x80   : > { %2039 = vmatmul.msk.f32.gmra.mxu1 %vm358_vm0, %v315_v37 }
  0x87   : > { %2008 = vmatmul.msk.f32.gmra.mxu0 %vm358_vm0, %v316_v38 }
  0x88   : > { %2040 = vmatmul.msk.f32.gmra.mxu1 %vm358_vm0, %v316_v38 }
  0x8f   : > { %2009 = vmatmul.msk.f32.gmra.mxu0 %vm358_vm0, %v317_v39 }
  0x90   : > { %2041 = vmatmul.msk.f32.gmra.mxu1 %vm358_vm0, %v317_v39 }
  0x97   : > { %2010 = vmatmul.msk.f32.gmra.mxu0 %vm358_vm0, %v318_v40 }
  0x98   : > { %2042 = vmatmul.msk.f32.gmra.mxu1 %vm358_vm0, %v318_v40 }
  0x9f   : > { %2011 = vmatmul.msk.f32.gmra.mxu0 %vm358_vm0, %v319_v41 }
  0xa0   : > { %2043 = vmatmul.msk.f32.gmra.mxu1 %vm358_vm0, %v319_v41 }
  0xa7   : > { %2012 = vmatmul.msk.f32.gmra.mxu0 %vm358_vm0, %v320_v42 }
  0xa8   : > { %2044 = vmatmul.msk.f32.gmra.mxu1 %vm358_vm0, %v320_v42 }
  0xaf   : > { %2013 = vmatmul.msk.f32.gmra.mxu0 %vm358_vm0, %v321_v43 }
  0xb0   : > { %2045 = vmatmul.msk.f32.gmra.mxu1 %vm358_vm0, %v321_v43 }
  0xb7   : > { %2014 = vmatmul.msk.f32.gmra.mxu0 %vm358_vm0, %v322_v47 }
  0xb8   : > { %2046 = vmatmul.msk.f32.gmra.mxu1 %vm358_vm0, %v322_v47 }
  0xbf   : > { %2015 = vmatmul.msk.f32.gmra.mxu0 %vm358_vm0, %v323_v51 }
  0xc0   : > { %2047 = vmatmul.msk.f32.gmra.mxu1 %vm358_vm0, %v323_v51 }
  0xc7   : > { %2016 = vmatmul.msk.f32.gmra.mxu0 %vm358_vm0, %v324_v55 }
  0xc8   : > { %2048 = vmatmul.msk.f32.gmra.mxu1 %vm358_vm0, %v324_v55 }
  0xcf   : > { %2017 = vmatmul.msk.f32.gmra.mxu0 %vm358_vm0, %v325_v59 }
  0xd0   : > { %2049 = vmatmul.msk.f32.gmra.mxu1 %vm358_vm0, %v325_v59 }
  0xd4   : > { %v2682_v44 = vpop.f32.mrf.mxu0 }
  0xd5   : > { %v2684_v45 = vpop.f32.mrf.mxu1 }
  0xd6   : > { %v633_v46 = vmax.f32 %v2682_v44, %v2684_v45 }
  0xd8   : > { %634 = vmax.xlane.f32.xlu0 %v633_v46 }
  0xdc   : > { %v2691_v48 = vpop.f32.mrf.mxu0 }
  0xdd   : > { %v2693_v49 = vpop.f32.mrf.mxu1 }
  0xde   : > { %v636_v50 = vmax.f32 %v2691_v48, %v2693_v49 }
  0xe0   : > { %637 = vmax.xlane.f32.xlu0 %v636_v50 }
  0xe4   : > { %v2700_v52 = vpop.f32.mrf.mxu0 }
  0xe5   : > { %3844 = vst [vmem:[#allocation8_spill] sm:$0xff] %v2700_v52  ;;  %v2702_v53 = vpop.f32.mrf.mxu1 }
  0xe6   : > { %3845 = vst [vmem:[#allocation9_spill] sm:$0xff] %v2702_v53  ;;  %v639_v54 = vmax.f32 %v2700_v52, %v2702_v53 }
  0xe8   : > { %640 = vmax.xlane.f32.xlu1 %v639_v54 }
  0xec   : > { %v2709_v56 = vpop.f32.mrf.mxu0 }
  0xed   : > { %v2711_v57 = vpop.f32.mrf.mxu1 }
  0xee   : > { %v642_v58 = vmax.f32 %v2709_v56, %v2711_v57 }
  0xf0   : > { %643 = vmax.xlane.f32.xlu1 %v642_v58 }
  0xf4   : > { %v2718_v60 = vpop.f32.mrf.mxu0 }
  0xf5   : > { %v2720_v61 = vpop.f32.mrf.mxu1 }
  0xf6   : > { %v645_v62 = vmax.f32 %v2718_v60, %v2720_v61 }
  0xf8   : > { %646 = vmax.xlane.f32.xlu2 %v645_v62 }
  0xfc   : > { %v2724_v63 = vpop.f32.mrf.mxu0 }
  0xfd   : > { %3846 = vst [vmem:[#allocation10_spill] sm:$0xff] %v2724_v63  ;;  %v2726_v0 = vpop.f32.mrf.mxu1 }
  0xfe   : > { %3847 = vst [vmem:[#allocation11_spill] sm:$0xff] %v2726_v0  ;;  %v648_v1 = vmax.f32 %v2724_v63, %v2726_v0 }
 0x100   : > { %649 = vmax.xlane.f32.xlu2 %v648_v1 }
 0x104   : > { %v2730_v2 = vpop.f32.mrf.mxu0 }
 0x105   : > { %v2732_v3 = vpop.f32.mrf.mxu1 }
 0x106   : > { %v651_v4 = vmax.f32 %v2730_v2, %v2732_v3 }
 0x108   : > { %652 = vmax.xlane.f32.xlu0 %v651_v4 }
 0x10c   : > { %v2736_v5 = vpop.f32.mrf.mxu0 }
 0x10d   : > { %v2738_v6 = vpop.f32.mrf.mxu1 }
 0x10e   : > { %v654_v7 = vmax.f32 %v2736_v5, %v2738_v6 }
 0x110   : > { %655 = vmax.xlane.f32.xlu2 %v654_v7 }
 0x114   : > { %v2745_v10 = vpop.f32.mrf.mxu0 }
 0x115   : > { %3848 = vst [vmem:[#allocation12_spill] sm:$0xff] %v2745_v10  ;;  %v2747_v11 = vpop.f32.mrf.mxu1 }
 0x116   : > { %3849 = vst [vmem:[#allocation13_spill] sm:$0xff] %v2747_v11  ;;  %v657_v26 = vmax.f32 %v2745_v10, %v2747_v11 }
 0x11c   : > { %v2765_v19 = vpop.f32.mrf.mxu0 }
 0x11d   : > { %v2767_v20 = vpop.f32.mrf.mxu1 }
 0x11e   : > { %v660_v35 = vmax.f32 %v2765_v19, %v2767_v20 }
 0x124   : > { %v2792_v29 = vpop.f32.mrf.mxu0 }
 0x125   : > { %v2794_v30 = vpop.f32.mrf.mxu1 }
 0x126   : > { %v663_v46 = vmax.f32 %v2792_v29, %v2794_v30 }
 0x12c   : > { %v2814_v40 = vpop.f32.mrf.mxu0 }
 0x12d   : > { %3851 = vst [vmem:[#allocation15_spill] sm:$0xff] %v2814_v40  ;;  %v2816_v41 = vpop.f32.mrf.mxu1 }
 0x12e   : > { %3852 = vst [vmem:[#allocation16_spill] sm:$0xff] %v2816_v41  ;;  %v666_v1 = vmax.f32 %v2814_v40, %v2816_v41 }
 0x134   : > { %v2837_v59 = vpop.f32.mrf.mxu0 }
 0x135   : > { %v2839_v62 = vpop.f32.mrf.mxu1 }
 0x14b   : > { %v2752_v13 = vpop.xlane.xlu0 %634 }
 0x14c   : > { %vm876_vm1 = vcmp.eq.f32.partialorder %v2682_v44, %v2752_v13  ;;  %vm877_vm2 = vcmp.eq.f32.partialorder %v2684_v45, %v2752_v13 }
 0x14d   : > { %v908_v14 = vsel %vm876_vm1, %v2743_v9, 256  ;;  %v909_v15 = vsel %vm877_vm2, %v2750_v12, 256 }
 0x14e   : > { %vm940_vm3 = vcmp.lt.s32.totalorder %v908_v14, %v909_v15 }
 0x14f   : > { %v2760_v16 = vsel %vm940_vm3, %v908_v14, %v909_v15 }
 0x150   : > { %v943_v17 = vshra.s32 %v2760_v16, 16 }
 0x152   : > { %v2763_v18 = vcvt.s32.f32 %v943_v17 }
 0x153   : > { %v2769_v21 = vpop.xlane.xlu0 %637 }
 0x154   : > { %vm878_vm4 = vcmp.eq.f32.partialorder %v2691_v48, %v2769_v21  ;;  %vm879_vm5 = vcmp.eq.f32.partialorder %v2693_v49, %v2769_v21  ;;  %946 = vmin.xlane.f32.xlu1 %v2763_v18 }
 0x155   : > { %v910_v22 = vsel %vm878_vm4, %v2743_v9, 256  ;;  %v911_v23 = vsel %vm879_vm5, %v2750_v12, 256 }
 0x156   : > { %vm956_vm6 = vcmp.lt.s32.totalorder %v910_v22, %v911_v23 }
 0x157   : > { %v2778_v24 = vsel %vm956_vm6, %v910_v22, %v911_v23  ;;  %v669_v23 = vmax.f32 %v2837_v59, %v2839_v62 }
 0x158   : > { %v959_v25 = vshra.s32 %v2778_v24, 16 }
 0x15a   : > { %v2783_v27 = vcvt.s32.f32 %v959_v25 }
 0x15b   : > { %v2785_v28 = vpop.xlane.xlu1 %640 }
 0x15c   : > { %3850 = vst [vmem:[#allocation14_spill] sm:$0xff] %v2785_v28  ;;  %vm880_vm7 = vcmp.eq.f32.partialorder %v2700_v52, %v2785_v28  ;;  %vm881_vm8 = vcmp.eq.f32.partialorder %v2702_v53, %v2785_v28  ;;  %962 = vmin.xlane.f32.xlu0 %v2783_v27  ;;  %658 = vmax.xlane.f32.xlu1 %v657_v26  ;;  %v2861_v26 = vpop.f32.mrf.mxu0 }
 0x15d   : > { %v912_v31 = vsel %vm880_vm7, %v2743_v9, 256  ;;  %v913_v32 = vsel %vm881_vm8, %v2750_v12, 256  ;;  %3854 = vst [vmem:[#allocation18_spill] sm:$0xff] %v2861_v26 }
 0x15e   : > { %vm972_vm9 = vcmp.lt.s32.totalorder %v912_v31, %v913_v32 }
 0x15f   : > { %v2798_v33 = vsel %vm972_vm9, %v912_v31, %v913_v32  ;;  %v2863_v31 = vpop.f32.mrf.mxu1 }
 0x160   : > { %v975_v34 = vshra.s32 %v2798_v33, 16  ;;  %3855 = vst [vmem:[#allocation19_spill] sm:$0xff] %v2863_v31 }
 0x162   : > { %v2803_v36 = vcvt.s32.f32 %v975_v34 }
 0x163   : > { %v2805_v37 = vpop.xlane.xlu1 %643 }
 0x164   : > { %vm882_vm10 = vcmp.eq.f32.partialorder %v2709_v56, %v2805_v37  ;;  %vm883_vm11 = vcmp.eq.f32.partialorder %v2711_v57, %v2805_v37  ;;  %978 = vmin.xlane.f32.xlu2 %v2803_v36  ;;  %661 = vmax.xlane.f32.xlu0 %v660_v35 }
 0x165   : > { %v914_v38 = vsel %vm882_vm10, %v2743_v9, 256  ;;  %v915_v39 = vsel %vm883_vm11, %v2750_v12, 256 }
 0x166   : > { %vm988_vm12 = vcmp.lt.s32.totalorder %v914_v38, %v915_v39 }
 0x167   : > { %v2818_v42 = vsel %vm988_vm12, %v914_v38, %v915_v39 }
 0x168   : > { %v991_v43 = vshra.s32 %v2818_v42, 16 }
 0x16a   : > { %v2823_v47 = vcvt.s32.f32 %v991_v43  ;;  %v672_v43 = vmax.f32 %v2861_v26, %v2863_v31 }
 0x16b   : > { %v2825_v50 = vpop.xlane.xlu2 %646 }
 0x16c   : > { %vm884_vm13 = vcmp.eq.f32.partialorder %v2718_v60, %v2825_v50  ;;  %vm885_vm14 = vcmp.eq.f32.partialorder %v2720_v61, %v2825_v50  ;;  %994 = vmin.xlane.f32.xlu1 %v2823_v47  ;;  %664 = vmax.xlane.f32.xlu2 %v663_v46 }
 0x16d   : > { %v916_v51 = vsel %vm884_vm13, %v2743_v9, 256  ;;  %v917_v54 = vsel %vm885_vm14, %v2750_v12, 256 }
 0x16e   : > { %vm1004_vm15 = vcmp.lt.s32.totalorder %v916_v51, %v917_v54 }
 0x16f   : > { %v2834_v55 = vsel %vm1004_vm15, %v916_v51, %v917_v54  ;;  %v2888_v54 = vpop.f32.mrf.mxu0 }
 0x170   : > { %v1007_v58 = vshra.s32 %v2834_v55, 16  ;;  %3856 = vst [vmem:[#allocation20_spill] sm:$0xff] %v2888_v54 }
 0x172   : > { %v2843_v4 = vcvt.s32.f32 %v1007_v58  ;;  %v2890_v58 = vpop.f32.mrf.mxu1 }
 0x173   : > { %v2845_v7 = vpop.xlane.xlu2 %649  ;;  %3857 = vst [vmem:[#allocation21_spill] sm:$0xff] %v2890_v58 }
 0x174   : > { %3853 = vst [vmem:[#allocation17_spill] sm:$0xff] %v2845_v7  ;;  %vm886_vm1 = vcmp.eq.f32.partialorder %v2724_v63, %v2845_v7  ;;  %vm887_vm2 = vcmp.eq.f32.partialorder %v2726_v0, %v2845_v7  ;;  %1010 = vmin.xlane.f32.xlu0 %v2843_v4  ;;  %667 = vmax.xlane.f32.xlu1 %v666_v1 }
 0x175   : > { %v918_v14 = vsel %vm886_vm1, %v2743_v9, 256  ;;  %v919_v15 = vsel %vm887_vm2, %v2750_v12, 256 }
 0x176   : > { %vm1020_vm3 = vcmp.lt.s32.totalorder %v918_v14, %v919_v15 }
 0x177   : > { %v2854_v17 = vsel %vm1020_vm3, %v918_v14, %v919_v15 }
 0x178   : > { %v1023_v22 = vshra.s32 %v2854_v17, 16 }
 0x17a   : > { %v2859_v25 = vcvt.s32.f32 %v1023_v22 }
 0x17b   : > { %v2865_v32 = vpop.xlane.xlu0 %652 }
 0x17c   : > { %vm888_vm4 = vcmp.eq.f32.partialorder %v2730_v2, %v2865_v32  ;;  %vm889_vm5 = vcmp.eq.f32.partialorder %v2732_v3, %v2865_v32  ;;  %1026 = vmin.xlane.f32.xlu2 %v2859_v25  ;;  %670 = vmax.xlane.f32.xlu1 %v669_v23  ;;  %v675_v23 = vmax.f32 %v2888_v54, %v2890_v58 }
 0x17d   : > { %v920_v34 = vsel %vm888_vm4, %v2743_v9, 256  ;;  %v921_v35 = vsel %vm889_vm5, %v2750_v12, 256 }
 0x17e   : > { %vm1036_vm6 = vcmp.lt.s32.totalorder %v920_v34, %v921_v35 }
 0x17f   : > { %v2874_v38 = vsel %vm1036_vm6, %v920_v34, %v921_v35  ;;  %v2902_v35 = vpop.f32.mrf.mxu0 }
 0x180   : > { %v1039_v39 = vshra.s32 %v2874_v38, 16  ;;  %3858 = vst [vmem:[#allocation22_spill] sm:$0xff] %v2902_v35 }
 0x182   : > { %v2879_v46 = vcvt.s32.f32 %v1039_v39  ;;  %v2904_v39 = vpop.f32.mrf.mxu1 }
 0x183   : > { %v2881_v51 = vpop.xlane.xlu2 %655  ;;  %3859 = vst [vmem:[#allocation23_spill] sm:$0xff] %v2904_v39 }
 0x184   : > { %vm890_vm7 = vcmp.eq.f32.partialorder %v2736_v5, %v2881_v51  ;;  %vm891_vm8 = vcmp.eq.f32.partialorder %v2738_v6, %v2881_v51  ;;  %1042 = vmin.xlane.f32.xlu2 %v2879_v46  ;;  %673 = vmax.xlane.f32.xlu1 %v672_v43  ;;  %v678_v43 = vmax.f32 %v2902_v35, %v2904_v39 }
 0x185   : > { %v922_v1 = vsel %vm890_vm7, %v2743_v9, 256  ;;  %v923_v14 = vsel %vm891_vm8, %v2750_v12, 256 }
 0x186   : > { %vm1052_vm9 = vcmp.lt.s32.totalorder %v922_v1, %v923_v14 }
 0x187   : > { %v2894_v15 = vsel %vm1052_vm9, %v922_v1, %v923_v14  ;;  %v942_v1 = vand.u32 65535, %v2760_v16 }
 0x188   : > { %v1055_v22 = vshra.s32 %v2894_v15, 16 }
 0x189   : > { %v944_v8 = vcvt.s32.f32 %v942_v1 }
 0x18a   : > { %v2899_v34 = vcvt.s32.f32 %v1055_v22 }
 0x18c   : > { %1058 = vmin.xlane.f32.xlu2 %v2899_v34  ;;  %676 = vmax.xlane.f32.xlu1 %v675_v23  ;;  %v958_v23 = vand.u32 65535, %v2778_v24 }
 0x18e   : > { %v960_v7 = vcvt.s32.f32 %v958_v23 }
 0x194   : > { %679 = vmax.xlane.f32.xlu1 %v678_v43  ;;  %v974_v43 = vand.u32 65535, %v2798_v33 }
 0x1c7   : > { %v2909_v14 = vpop.xlane.xlu1 %946 }
 0x1c8   : > { %vm948_vm10 = vcmp.eq.f32.partialorder %v2763_v18, %v2909_v14 }
 0x1c9   : > { %v949_v22 = vsel %vm948_vm10, %v944_v8, inf }
 0x1ca   : > { %950 = vmin.xlane.f32.xlu0 %v949_v22 }
 0x1cf   : > { %v2914_v0 = vpop.xlane.xlu0 %962  ;;  %v2916_v63 = vpop.xlane.xlu1 %658 }
 0x1d0   : > { %3860 = vst [vmem:[#allocation24_spill] sm:$0xff] %v2916_v63  ;;  %vm964_vm11 = vcmp.eq.f32.partialorder %v2783_v27, %v2914_v0  ;;  %vm892_vm12 = vcmp.eq.f32.partialorder %v2745_v10, %v2916_v63  ;;  %vm893_vm13 = vcmp.eq.f32.partialorder %v2747_v11, %v2916_v63  ;;  %v976_v11 = vcvt.s32.f32 %v974_v43 }
 0x1d1   : > { %v965_v16 = vsel %vm964_vm11, %v960_v7, inf  ;;  %v924_v8 = vsel %vm892_vm12, %v2743_v9, 256  ;;  %v925_v18 = vsel %vm893_vm13, %v2750_v12, 256 }
 0x1d2   : > { %966 = vmin.xlane.f32.xlu0 %v965_v16  ;;  %vm1068_vm14 = vcmp.lt.s32.totalorder %v924_v8, %v925_v18 }
 0x1d3   : > { %v2926_v24 = vsel %vm1068_vm14, %v924_v8, %v925_v18  ;;  %v990_v18 = vand.u32 65535, %v2818_v42 }
 0x1d4   : > { %v1071_v1 = vshra.s32 %v2926_v24, 16 }
 0x1d5   : > { %v992_v63 = vcvt.s32.f32 %v990_v18 }
 0x1d6   : > { %v2932_v22 = vcvt.s32.f32 %v1071_v1 }
 0x1d7   : > { %v2930_v27 = vpop.xlane.xlu2 %978  ;;  %v2934_v23 = vpop.xlane.xlu0 %661 }
 0x1d8   : > { %vm980_vm15 = vcmp.eq.f32.partialorder %v2803_v36, %v2930_v27  ;;  %vm894_vm1 = vcmp.eq.f32.partialorder %v2765_v19, %v2934_v23  ;;  %vm895_vm2 = vcmp.eq.f32.partialorder %v2767_v20, %v2934_v23  ;;  %1074 = vmin.xlane.f32.xlu2 %v2932_v22 }
 0x1d9   : > { %v981_v33 = vsel %vm980_vm15, %v976_v11, inf  ;;  %v926_v7 = vsel %vm894_vm1, %v2743_v9, 256  ;;  %v927_v16 = vsel %vm895_vm2, %v2750_v12, 256 }
 0x1da   : > { %982 = vmin.xlane.f32.xlu0 %v981_v33  ;;  %vm1084_vm3 = vcmp.lt.s32.totalorder %v926_v7, %v927_v16 }
 0x1db   : > { %v2945_v8 = vsel %vm1084_vm3, %v926_v7, %v927_v16  ;;  %v1006_v16 = vand.u32 65535, %v2834_v55 }
 0x1dc   : > { %v1087_v36 = vshra.s32 %v2945_v8, 16 }
 0x1dd   : > { %v1008_v52 = vcvt.s32.f32 %v1006_v16 }
 0x1de   : > { %v2951_v1 = vcvt.s32.f32 %v1087_v36 }
 0x1df   : > { %v2949_v43 = vpop.xlane.xlu1 %994  ;;  %v2953_v10 = vpop.xlane.xlu2 %664 }
 0x1e0   : > { %vm996_vm4 = vcmp.eq.f32.partialorder %v2823_v47, %v2949_v43  ;;  %vm896_vm5 = vcmp.eq.f32.partialorder %v2792_v29, %v2953_v10  ;;  %vm897_vm6 = vcmp.eq.f32.partialorder %v2794_v30, %v2953_v10  ;;  %1090 = vmin.xlane.f32.xlu2 %v2951_v1 }
 0x1e1   : > { %v997_v11 = vsel %vm996_vm4, %v992_v63, inf  ;;  %v928_v42 = vsel %vm896_vm5, %v2743_v9, 256  ;;  %v929_v33 = vsel %vm897_vm6, %v2750_v12, 256 }
 0x1e2   : > { %998 = vmin.xlane.f32.xlu0 %v997_v11  ;;  %vm1100_vm7 = vcmp.lt.s32.totalorder %v928_v42, %v929_v33 }
 0x1e3   : > { %v2964_v7 = vsel %vm1100_vm7, %v928_v42, %v929_v33  ;;  %v1022_v42 = vand.u32 65535, %v2854_v17 }
 0x1e4   : > { %v1103_v47 = vshra.s32 %v2964_v7, 16 }
 0x1e6   : > { %v2970_v36 = vcvt.s32.f32 %v1103_v47 }
 0x1e7   : > { %v2968_v18 = vpop.xlane.xlu0 %1010  ;;  %v2972_v53 = vpop.xlane.xlu1 %667 }
 0x1e8   : > { %3861 = vst [vmem:[#allocation25_spill] sm:$0xff] %v2972_v53  ;;  %vm1012_vm8 = vcmp.eq.f32.partialorder %v2843_v4, %v2968_v18  ;;  %vm898_vm9 = vcmp.eq.f32.partialorder %v2814_v40, %v2972_v53  ;;  %vm899_vm10 = vcmp.eq.f32.partialorder %v2816_v41, %v2972_v53  ;;  %1106 = vmin.xlane.f32.xlu1 %v2970_v36  ;;  %v1024_v41 = vcvt.s32.f32 %v1022_v42 }
 0x1e9   : > { %v1013_v63 = vsel %vm1012_vm8, %v1008_v52, inf  ;;  %v930_v55 = vsel %vm898_vm9, %v2743_v9, 256  ;;  %v931_v11 = vsel %vm899_vm10, %v2750_v12, 256  ;;  %vm1196_vm9 = vcmask 7168  }
 0x1ea   : > { %1014 = vmin.xlane.f32.xlu0 %v1013_v63  ;;  %vm1116_vm11 = vcmp.lt.s32.totalorder %v930_v55, %v931_v11 }
 0x1eb   : > { %v2984_v33 = vsel %vm1116_vm11, %v930_v55, %v931_v11 }
 0x1ec   : > { %v1119_v4 = vshra.s32 %v2984_v33, 16 }
 0x1ee   : > { %v2997_v52 = vcvt.s32.f32 %v1119_v4 }
 0x1ef   : > { %v2987_v16 = vpop.xlane.xlu2 %1026  ;;  %v2989_v47 = vpop.xlane.xlu1 %670 }
 0x1f0   : > { %vm1028_vm12 = vcmp.eq.f32.partialorder %v2859_v25, %v2987_v16  ;;  %vm900_vm13 = vcmp.eq.f32.partialorder %v2837_v59, %v2989_v47  ;;  %vm901_vm14 = vcmp.eq.f32.partialorder %v2839_v62, %v2989_v47  ;;  %v1038_v25 = vand.u32 65535, %v2874_v38 }
 0x1f1   : > { %v1029_v17 = vsel %vm1028_vm12, %v1024_v41, inf  ;;  %v932_v63 = vsel %vm900_vm13, %v2743_v9, 256  ;;  %v933_v55 = vsel %vm901_vm14, %v2750_v12, 256 }
 0x1f2   : > { %1030 = vmin.xlane.f32.xlu2 %v1029_v17  ;;  %1122 = vmin.xlane.f32.xlu0 %v2997_v52  ;;  %vm1132_vm15 = vcmp.lt.s32.totalorder %v932_v63, %v933_v55  ;;  %v1040_v4 = vcvt.s32.f32 %v1038_v25 }
 0x1f3   : > { %v3002_v11 = vsel %vm1132_vm15, %v932_v63, %v933_v55  ;;  %v1054_v55 = vand.u32 65535, %v2894_v15 }
 0x1f4   : > { %v1135_v42 = vshra.s32 %v3002_v11, 16 }
 0x1f6   : > { %v3016_v41 = vcvt.s32.f32 %v1135_v42  ;;  %v1056_v42 = vcvt.s32.f32 %v1054_v55 }
 0x1f7   : > { %v3006_v40 = vpop.xlane.xlu2 %1042  ;;  %v3008_v53 = vpop.xlane.xlu1 %673 }
 0x1f8   : > { %3862 = vst [vmem:[#allocation26_spill] sm:$0xff] %v3008_v53  ;;  %vm1044_vm1 = vcmp.eq.f32.partialorder %v2879_v46, %v3006_v40  ;;  %vm902_vm2 = vcmp.eq.f32.partialorder %v2861_v26, %v3008_v53  ;;  %vm903_vm3 = vcmp.eq.f32.partialorder %v2863_v31, %v3008_v53  ;;  %v985_v26 = vcvt.f32.s32 %v2930_v27 }
 0x1f9   : > { %v1045_v17 = vsel %vm1044_vm1, %v1040_v4, inf  ;;  %v934_v38 = vsel %vm902_vm2, %v2743_v9, 256  ;;  %v935_v63 = vsel %vm903_vm3, %v2750_v12, 256 }
 0x1fa   : > { %1138 = vmin.xlane.f32.xlu2 %v3016_v41  ;;  %1046 = vmin.xlane.f32.xlu1 %v1045_v17  ;;  %vm1148_vm4 = vcmp.lt.s32.totalorder %v934_v38, %v935_v63 }
 0x1fb   : > { %v3022_v46 = vsel %vm1148_vm4, %v934_v38, %v935_v63 }
 0x1fc   : > { %v1151_v25 = vshra.s32 %v3022_v46, 16 }
 0x1fe   : > { %v3035_v15 = vcvt.s32.f32 %v1151_v25  ;;  %v953_v25 = vcvt.f32.s32 %v2909_v14  ;;  %v969_v14 = vcvt.f32.s32 %v2914_v0  ;;  %v1070_v0 = vand.u32 65535, %v2926_v24 }
 0x1ff   : > { %v3025_v28 = vpop.xlane.xlu2 %1058  ;;  %v3027_v31 = vpop.xlane.xlu1 %676 }
 0x200   : > { %3863 = vst [vmem:[#allocation27_spill] sm:$0xff] %v3027_v31  ;;  %vm1060_vm5 = vcmp.eq.f32.partialorder %v2899_v34, %v3025_v28  ;;  %vm904_vm6 = vcmp.eq.f32.partialorder %v2888_v54, %v3027_v31  ;;  %vm905_vm7 = vcmp.eq.f32.partialorder %v2890_v58, %v3027_v31 }
 0x201   : > { %v1061_v4 = vsel %vm1060_vm5, %v1056_v42, inf  ;;  %v936_v17 = vsel %vm904_vm6, %v2743_v9, 256  ;;  %v937_v38 = vsel %vm905_vm7, %v2750_v12, 256  ;;  %v954_v42 = vshll.u32 %v953_v25, 16 }
 0x202   : > { %1062 = vmin.xlane.f32.xlu0 %v1061_v4  ;;  %1154 = vmin.xlane.f32.xlu1 %v3035_v15  ;;  %vm1164_vm8 = vcmp.lt.s32.totalorder %v936_v17, %v937_v38 }
 0x203   : > { %v3040_v63 = vsel %vm1164_vm8, %v936_v17, %v937_v38  ;;  %v970_v38 = vshll.u32 %v969_v14, 16  ;;  %v1072_v14 = vcvt.s32.f32 %v1070_v0  ;;  %v3836_v0 = vmov 0.0  }
 0x204   : > { %v1167_v34 = vshra.s32 %v3040_v63, 16 }
 0x206   : > { %v3043_v55 = vcvt.s32.f32 %v1167_v34 }
 0x207   : > { %v3053_v17 = vpop.xlane.xlu1 %679 }
 0x208   : > { %3864 = vst [vmem:[#allocation28_spill] sm:$0xff] %v3053_v17  ;;  %vm906_vm12 = vcmp.eq.f32.partialorder %v2902_v35, %v3053_v17  ;;  %vm907_vm13 = vcmp.eq.f32.partialorder %v2904_v39, %v3053_v17  ;;  %v1086_v35 = vand.u32 65535, %v2945_v8 }
 0x209   : > { %v938_v25 = vsel %vm906_vm12, %v2743_v9, 256 }
 0x20a   : > { %1170 = vmin.xlane.f32.xlu0 %v3043_v55 }
 0x23d   : > { %v951_v58 = vpop.xlane.xlu0 %950 }
 0x23e   : > { %v952_v54 = vcvt.f32.s32 %v951_v58  ;;  %v3834_v58 = vmov 1.0  }
 0x240   : > { %v955_v4 = vadd.s32 %v954_v42, %v952_v54  ;;  %v939_v42 = vsel %vm907_vm13, %v2750_v12, 256 }
 0x241   : > { %vm1180_vm1 = vcmp.lt.s32.totalorder %v938_v25, %v939_v42 }
 0x242   : > { %1197 = vst.msk [vmem:[%s3051_s20] sm:$0xff] %vm1196_vm9, %v955_v4  ;;  %vm1213_vm10 = vcmp.eq.s32.totalorder %v2743_v9, %v955_v4  ;;  %vm1214_vm11 = vcmp.eq.s32.totalorder %v2750_v12, %v955_v4 }
 0x243   : > { %2082 = vmatmul.msk.f32.vlgmr.msra.gmra.mxu2 %vm1213_vm10, %v3834_v58  ;;  %2098 = vmatmul.msk.f32.vlgmr.msra.gmra.mxu3 %vm1214_vm11, %v3834_v58 }
 0x245   : > { %v967_v54 = vpop.xlane.xlu0 %966 }
 0x246   : > { %v968_v34 = vcvt.f32.s32 %v967_v54 }
 0x248   : > { %v971_v31 = vadd.s32 %v970_v38, %v968_v34  ;;  %v3088_v38 = vsel %vm1180_vm1, %v938_v25, %v939_v42  ;;  %v986_v34 = vshll.u32 %v985_v26, 16  ;;  %v2050_v26 = vsel %vm1213_vm10, 1.0, %v3836_v0 }
 0x249   : > { %3866 = vst [vmem:[#allocation30_spill] sm:$0xff] %v3088_v38  ;;  %v1183_v53 = vshra.s32 %v3088_v38, 16  ;;  %v3867_v25 = vmov 1.0  }
 0x24a   : > { %1198 = vst.msk [vmem:[%s3051_s20 + $0x8] sm:$0xff] %vm1196_vm9, %v971_v31  ;;  %vm1215_vm14 = vcmp.eq.s32.totalorder %v2743_v9, %v971_v31  ;;  %vm1216_vm15 = vcmp.eq.s32.totalorder %v2750_v12, %v971_v31 }
 0x24b   : > { %2083 = vmatmul.msk.f32.gmra.mxu2 %vm1215_vm14, %v3834_v58  ;;  %2099 = vmatmul.msk.f32.gmra.mxu3 %vm1216_vm15, %v3834_v58  ;;  %v3084_v24 = vpop.xlane.xlu2 %1074  ;;  %v1001_v58 = vcvt.f32.s32 %v2949_v43 }
 0x24c   : > { %3865 = vst [vmem:[#allocation29_spill] sm:$0xff] %v3084_v24  ;;  %vm1076_vm2 = vcmp.eq.f32.partialorder %v2932_v22, %v3084_v24  ;;  %v1088_v22 = vcvt.s32.f32 %v1086_v35  ;;  %v1017_v24 = vcvt.f32.s32 %v2968_v18 }
 0x24d   : > { %v983_v27 = vpop.xlane.xlu0 %982  ;;  %v1077_v54 = vsel %vm1076_vm2, %v1072_v14, inf  ;;  %v3111_v14 = vcvt.s32.f32 %v1183_v53 }
 0x24e   : > { %v984_v39 = vcvt.f32.s32 %v983_v27  ;;  %1078 = vmin.xlane.f32.xlu2 %v1077_v54  ;;  %v1002_v54 = vshll.u32 %v1001_v58, 16  ;;  %v1018_v31 = vshll.u32 %v1017_v24, 16 }
 0x250   : > { %v987_v17 = vadd.s32 %v986_v34, %v984_v39  ;;  %v2051_v39 = vsel %vm1214_vm11, 1.0, %v3836_v0 }
 0x252   : > { %1199 = vst.msk [vmem:[%s3051_s20 + $0x10] sm:$0xff] %vm1196_vm9, %v987_v17  ;;  %vm1217_vm3 = vcmp.eq.s32.totalorder %v2743_v9, %v987_v17  ;;  %vm1218_vm4 = vcmp.eq.s32.totalorder %v2750_v12, %v987_v17 }
 0x253   : > { %v2054_v8 = vsel %vm1217_vm3, 1.0, %v3836_v0  ;;  %2084 = vmatmul.msk.f32.gmra.mxu2 %vm1217_vm3, %v3867_v25  ;;  %v2055_v43 = vsel %vm1218_vm4, 1.0, %v3836_v0  ;;  %2100 = vmatmul.msk.f32.gmra.mxu3 %vm1218_vm4, %v3867_v25  ;;  %v3107_v17 = vpop.xlane.xlu2 %1090  ;;  %v1102_v0 = vand.u32 65535, %v2964_v7 }
 0x254   : > { %v1712_v35 = vmax.f32 %v2050_v26, %v2054_v8  ;;  %v1733_v42 = vmax.f32 %v2051_v39, %v2055_v43  ;;  %vm1092_vm5 = vcmp.eq.f32.partialorder %v2951_v1, %v3107_v17  ;;  %v3868_v1 = vmov 0.0  }
 0x255   : > { %v999_v4 = vpop.xlane.xlu0 %998  ;;  %v1093_v27 = vsel %vm1092_vm5, %v1088_v22, inf  ;;  %v1104_v53 = vcvt.s32.f32 %v1102_v0  ;;  %v2052_v58 = vsel %vm1215_vm14, 1.0, %v3868_v1  ;;  %v2053_v22 = vsel %vm1216_vm15, 1.0, %v3868_v1 }
 0x256   : > { %v1000_v34 = vcvt.f32.s32 %v999_v4  ;;  %1094 = vmin.xlane.f32.xlu1 %v1093_v27  ;;  %1186 = vmin.xlane.f32.xlu2 %v3111_v14  ;;  %v1118_v27 = vand.u32 65535, %v2984_v33 }
 0x258   : > { %v1003_v38 = vadd.s32 %v1002_v54, %v1000_v34  ;;  %v1033_v54 = vcvt.f32.s32 %v2987_v16 }
 0x25a   : > { %1200 = vst.msk [vmem:[%s3051_s20 + $0x18] sm:$0xff] %vm1196_vm9, %v1003_v38  ;;  %vm1219_vm6 = vcmp.eq.s32.totalorder %v2743_v9, %v1003_v38  ;;  %vm1220_vm7 = vcmp.eq.s32.totalorder %v2750_v12, %v1003_v38 }
 0x25b   : > { %v2056_v7 = vsel %vm1219_vm6, 1.0, %v3868_v1  ;;  %2085 = vmatmul.msk.f32.gmra.mxu2 %vm1219_vm6, %v3867_v25  ;;  %v2057_v18 = vsel %vm1220_vm7, 1.0, %v3868_v1  ;;  %2101 = vmatmul.msk.f32.gmra.mxu3 %vm1220_vm7, %v3867_v25  ;;  %v3130_v26 = vpop.xlane.xlu1 %1106 }
 0x25c   : > { %v1713_v38 = vmax.f32 %v2052_v58, %v2056_v7  ;;  %v1734_v0 = vmax.f32 %v2053_v22, %v2057_v18  ;;  %vm1108_vm8 = vcmp.eq.f32.partialorder %v2970_v36, %v3130_v26  ;;  %v1120_v58 = vcvt.s32.f32 %v1118_v27 }
 0x25d   : > { %v1015_v39 = vpop.xlane.xlu0 %1014  ;;  %v1109_v8 = vsel %vm1108_vm8, %v1104_v53, inf  ;;  %v1034_v22 = vshll.u32 %v1033_v54, 16 }
 0x25e   : > { %v1016_v43 = vcvt.f32.s32 %v1015_v39  ;;  %1110 = vmin.xlane.f32.xlu0 %v1109_v8  ;;  %v1134_v8 = vand.u32 65535, %v3002_v11 }
 0x260   : > { %v1019_v4 = vadd.s32 %v1018_v31, %v1016_v43  ;;  %v1049_v31 = vcvt.f32.s32 %v3006_v40  ;;  %v682_v43 = vsub.f32 %v2684_v45, %v2752_v13  ;;  %v1136_v54 = vcvt.s32.f32 %v1134_v8 }
 0x261   : > { %v1065_v45 = vcvt.f32.s32 %v3025_v28 }
 0x262   : > { %1201 = vst.msk [vmem:[%s3051_s20 + $0x20] sm:$0xff] %vm1196_vm9, %v1019_v4  ;;  %vm1221_vm10 = vcmp.eq.s32.totalorder %v2743_v9, %v1019_v4  ;;  %vm1222_vm11 = vcmp.eq.s32.totalorder %v2750_v12, %v1019_v4 }
 0x263   : > { %v2058_v34 = vsel %vm1221_vm10, 1.0, %v3868_v1  ;;  %2086 = vmatmul.msk.f32.gmra.mxu2 %vm1221_vm10, %v3867_v25  ;;  %v2059_v36 = vsel %vm1222_vm11, 1.0, %v3868_v1  ;;  %2102 = vmatmul.msk.f32.gmra.mxu3 %vm1222_vm11, %v3867_v25 }
 0x264   : > { %v3144_v24 = vmax.f32 %v1712_v35, %v2058_v34  ;;  %v3146_v33 = vmax.f32 %v1733_v42, %v2059_v36  ;;  %v1050_v34 = vshll.u32 %v1049_v31, 16  ;;  %v1066_v31 = vshll.u32 %v1065_v45, 16 }
 0x265   : > { %v1031_v16 = vpop.xlane.xlu2 %1030  ;;  %v3148_v53 = vpop.xlane.xlu0 %1122 }
 0x266   : > { %v1032_v7 = vcvt.f32.s32 %v1031_v16  ;;  %vm1124_vm12 = vcmp.eq.f32.partialorder %v2997_v52, %v3148_v53  ;;  %v681_v52 = vsub.f32 %v2682_v44, %v2752_v13  ;;  %v684_v13 = vsub.f32 %v2693_v49, %v2769_v21 }
 0x267   : > { %v1125_v18 = vsel %vm1124_vm12, %v1120_v58, inf }
 0x268   : > { %v1035_v39 = vadd.s32 %v1034_v22, %v1032_v7  ;;  %1126 = vmin.xlane.f32.xlu1 %v1125_v18  ;;  %v713_v58 = vmul.f32 1.442695, %v681_v52  ;;  %v683_v22 = vsub.f32 %v2691_v48, %v2769_v21  ;;  %v687_v48 = vsub.f32 %v2709_v56, %v2805_v37 }
 0x269   : > { %v688_v21 = vsub.f32 %v2711_v57, %v2805_v37  ;;  %v719_v56 = vmul.f32 1.442695, %v684_v13  ;;  %v689_v37 = vsub.f32 %v2718_v60, %v2825_v50  ;;  %v693_v60 = vsub.f32 %v2730_v2, %v2865_v32 }
 0x26a   : > { %1202 = vst.msk [vmem:[%s3051_s20 + $0x28] sm:$0xff] %vm1196_vm9, %v1035_v39  ;;  %vm1223_vm13 = vcmp.eq.s32.totalorder %v2743_v9, %v1035_v39  ;;  %vm1224_vm14 = vcmp.eq.s32.totalorder %v2750_v12, %v1035_v39  ;;  %2168 = vpow2.f32 %v713_v58  ;;  %v717_v8 = vmul.f32 1.442695, %v683_v22 }
 0x26b   : > { %v2060_v35 = vsel %vm1223_vm13, 1.0, %v3868_v1  ;;  %2087 = vmatmul.msk.f32.gmra.mxu2 %vm1223_vm13, %v3867_v25  ;;  %v2061_v42 = vsel %vm1224_vm14, 1.0, %v3868_v1  ;;  %2103 = vmatmul.msk.f32.gmra.mxu3 %vm1224_vm14, %v3867_v25  ;;  %v725_v52 = vmul.f32 1.442695, %v687_v48  ;;  %v737_v13 = vmul.f32 1.442695, %v693_v60 }
 0x26c   : > { %v3164_v11 = vmax.f32 %v1713_v38, %v2060_v35  ;;  %v3166_v40 = vmax.f32 %v1734_v0, %v2061_v42  ;;  %v715_v38 = vmul.f32 1.442695, %v682_v43  ;;  %v1150_v0 = vand.u32 65535, %v3022_v46 }
 0x26d   : > { %v3170_v4 = vpop.xlane.xlu2 %1138  ;;  %v1047_v27 = vpop.xlane.xlu1 %1046 }
 0x26e   : > { %v1048_v36 = vcvt.f32.s32 %v1047_v27  ;;  %vm1140_vm15 = vcmp.eq.f32.partialorder %v3016_v41, %v3170_v4  ;;  %2170 = vpow2.f32 %v715_v38  ;;  %v1152_v39 = vcvt.s32.f32 %v1150_v0 }
 0x26f   : > { %v1141_v16 = vsel %vm1140_vm15, %v1136_v54, inf  ;;  %v727_v27 = vmul.f32 1.442695, %v688_v21  ;;  %v1166_v54 = vand.u32 65535, %v3040_v63  ;;  %2172 = vpow2.f32 %v717_v8 }
 0x270   : > { %v1051_v44 = vadd.s32 %v1050_v34, %v1048_v36  ;;  %1142 = vmin.xlane.f32.xlu2 %v1141_v16  ;;  %v3205_v57 = vpop.eup %2168  ;;  %2174 = vpow2.f32 %v719_v56  ;;  %v690_v34 = vsub.f32 %v2720_v61, %v2825_v50  ;;  %v694_v50 = vsub.f32 %v2732_v3, %v2865_v32 }
 0x271   : > { %2176 = vpow2.f32 %v725_v52  ;;  %v729_v38 = vmul.f32 1.442695, %v689_v37  ;;  %v695_v21 = vsub.f32 %v2736_v5, %v2881_v51  ;;  %v700_v8 = vsub.f32 %v2767_v20, %v2934_v23 }
 0x272   : > { %1203 = vst.msk [vmem:[%s3051_s20 + $0x30] sm:$0xff] %vm1196_vm9, %v1051_v44  ;;  %vm1225_vm1 = vcmp.eq.s32.totalorder %v2743_v9, %v1051_v44  ;;  %vm1226_vm2 = vcmp.eq.s32.totalorder %v2750_v12, %v1051_v44  ;;  %2178 = vpow2.f32 %v727_v27  ;;  %v1168_v44 = vcvt.s32.f32 %v1166_v54 }
 0x273   : > { %v3185_v41 = vsel %vm1225_vm1, 1.0, %v3868_v1  ;;  %2088 = vmatmul.msk.f32.gmra.mxu2 %vm1225_vm1, %v3867_v25  ;;  %v3189_v46 = vsel %vm1226_vm2, 1.0, %v3868_v1  ;;  %2104 = vmatmul.msk.f32.gmra.mxu3 %vm1226_vm2, %v3867_v25  ;;  %v731_v0 = vmul.f32 1.442695, %v690_v34  ;;  %v739_v3 = vmul.f32 1.442695, %v694_v50 }
 0x274   : > { %v1716_v28 = vmax.f32 %v3144_v24, %v3185_v41  ;;  %v1737_v49 = vmax.f32 %v3146_v33, %v3189_v46  ;;  %2180 = vpow2.f32 %v729_v38  ;;  %v701_v20 = vsub.f32 %v2792_v29, %v2953_v10 }
 0x275   : > { %v1063_v7 = vpop.xlane.xlu0 %1062  ;;  %v3200_v18 = vpop.xlane.xlu1 %1154  ;;  %2182 = vpow2.f32 %v731_v0  ;;  %v705_v27 = vsub.f32 %v2837_v59, %v2989_v47  ;;  %v706_v54 = vsub.f32 %v2839_v62, %v2989_v47  ;;  %v3869_v62 = vld [vmem:[#allocation26_spill] sm:$0xff]  ;;  %v3871_v0 = vld [vmem:[#allocation19_spill] sm:$0xff] }
 0x276   : > { %v1064_v35 = vcvt.f32.s32 %v1063_v7  ;;  %vm1156_vm3 = vcmp.eq.f32.partialorder %v3035_v15, %v3200_v18  ;;  %v3213_v15 = vpop.eup %2170  ;;  %v696_v7 = vsub.f32 %v2738_v6, %v2881_v51  ;;  %2184 = vpow2.f32 %v737_v13  ;;  %v3870_v47 = vld [vmem:[#allocation18_spill] sm:$0xff]  ;;  %v3872_v13 = vld [vmem:[#allocation28_spill] sm:$0xff] }
 0x277   : > { %v1157_v42 = vsel %vm1156_vm3, %v1152_v39, inf  ;;  %v777_v2 = vadd.f32 %v3213_v15, %v3205_v57  ;;  %v3239_v45 = vpop.eup %2172  ;;  %v699_v39 = vsub.f32 %v2765_v19, %v2934_v23  ;;  %2186 = vpow2.f32 %v739_v3  ;;  %v3873_v3 = vld [vmem:[#allocation22_spill] sm:$0xff] }
 0x278   : > { %v1067_v43 = vadd.s32 %v1066_v31, %v1064_v35  ;;  %1158 = vmin.xlane.f32.xlu0 %v1157_v42  ;;  %v3241_v48 = vpop.eup %2174  ;;  %v741_v31 = vmul.f32 1.442695, %v695_v21  ;;  %v743_v56 = vmul.f32 1.442695, %v696_v7  ;;  %v751_v19 = vmul.f32 1.442695, %v700_v8 }
 0x279   : > { %v3243_v32 = vpop.eup %2176  ;;  %v780_v35 = vadd.f32 %v3241_v48, %v3239_v45  ;;  %v749_v52 = vmul.f32 1.442695, %v699_v39  ;;  %v753_v37 = vmul.f32 1.442695, %v701_v20  ;;  %v707_v38 = vsub.f32 %v3870_v47, %v3869_v62  ;;  %v3874_v7 = vld [vmem:[#allocation23_spill] sm:$0xff]  ;;  %v3875_v47 = vld [vmem:[#allocation29_spill] sm:$0xff] }
 0x27a   : > { %1204 = vst.msk [vmem:[%s3051_s20 + $0x38] sm:$0xff] %vm1196_vm9, %v1067_v43  ;;  %vm1227_vm4 = vcmp.eq.s32.totalorder %v2743_v9, %v1067_v43  ;;  %vm1228_vm5 = vcmp.eq.s32.totalorder %v2750_v12, %v1067_v43  ;;  %2188 = vpow2.f32 %v741_v31  ;;  %v702_v43 = vsub.f32 %v2794_v30, %v2953_v10 }
 0x27b   : > { %v3218_v63 = vsel %vm1227_vm4, 1.0, %v3868_v1  ;;  %2089 = vmatmul.msk.f32.gmra.mxu2 %vm1227_vm4, %v3867_v25  ;;  %v3222_v36 = vsel %vm1228_vm5, 1.0, %v3868_v1  ;;  %2105 = vmatmul.msk.f32.gmra.mxu3 %vm1228_vm5, %v3867_v25  ;;  %2190 = vpow2.f32 %v743_v56  ;;  %v763_v30 = vmul.f32 1.442695, %v706_v54 }
 0x27c   : > { %v1717_v16 = vmax.f32 %v3164_v11, %v3218_v63  ;;  %v1738_v61 = vmax.f32 %v3166_v40, %v3222_v36  ;;  %2192 = vpow2.f32 %v749_v52  ;;  %v755_v60 = vmul.f32 1.442695, %v702_v43 }
 0x27d   : > { %v3233_v58 = vpop.xlane.xlu0 %1170  ;;  %2194 = vpow2.f32 %v751_v19  ;;  %v711_v21 = vsub.f32 %v3873_v3, %v3872_v13  ;;  %v712_v39 = vsub.f32 %v3874_v7, %v3872_v13  ;;  %v765_v8 = vmul.f32 1.442695, %v707_v38  ;;  %v3878_v3 = vld [vmem:[#allocation9_spill] sm:$0xff] }
 0x27e   : > { %vm1172_vm6 = vcmp.eq.f32.partialorder %v3043_v55, %v3233_v58  ;;  %v3247_v55 = vpop.eup %2178  ;;  %2196 = vpow2.f32 %v753_v37  ;;  %v1081_v38 = vcvt.f32.s32 %v3875_v47 }
 0x27f   : > { %v1173_v22 = vsel %vm1172_vm6, %v1168_v44, inf  ;;  %v786_v5 = vadd.f32 %v3247_v55, %v3243_v32  ;;  %v3259_v42 = vpop.eup %2180  ;;  %v761_v44 = vmul.f32 1.442695, %v705_v27  ;;  %2198 = vpow2.f32 %v755_v60 }
 0x280   : > { %1174 = vmin.xlane.f32.xlu1 %v1173_v22  ;;  %778 = vadd.xlane.f32.xlu0 %v777_v2  ;;  %v3261_v6 = vpop.eup %2182  ;;  %v708_v22 = vsub.f32 %v3871_v0, %v3869_v62  ;;  %v773_v52 = vmul.f32 1.442695, %v711_v21  ;;  %v775_v20 = vmul.f32 1.442695, %v712_v39  ;;  %v3876_v0 = vld [vmem:[#allocation14_spill] sm:$0xff]  ;;  %v1082_v39 = vshll.u32 %v1081_v38, 16 }
 0x281   : > { %v3263_v51 = vpop.eup %2184  ;;  %v789_v34 = vadd.f32 %v3261_v6, %v3259_v42  ;;  %2200 = vpow2.f32 %v761_v44  ;;  %v686_v21 = vsub.f32 %v3878_v3, %v3876_v0 }
 0x282   : > { %v3267_v23 = vpop.eup %2186  ;;  %2202 = vpow2.f32 %v763_v30 }
 0x283   : > { %v795_v29 = vadd.f32 %v3267_v23, %v3263_v51  ;;  %v3279_v50 = vpop.eup %2188  ;;  %2204 = vpow2.f32 %v765_v8 }
 0x284   : > { %v3281_v10 = vpop.eup %2190 }
 0x285   : > { %v3283_v59 = vpop.eup %2192  ;;  %v798_v31 = vadd.f32 %v3281_v10, %v3279_v50 }
 0x286   : > { %v3287_v2 = vpop.eup %2194 }
 0x287   : > { %v3299_v56 = vpop.eup %2196 }
 0x288   : > { %781 = vadd.xlane.f32.xlu1 %v780_v35  ;;  %787 = vadd.xlane.f32.xlu0 %v786_v5  ;;  %v804_v35 = vadd.f32 %v3287_v2, %v3283_v59  ;;  %v767_v5 = vmul.f32 1.442695, %v708_v22  ;;  %v3301_v19 = vpop.eup %2198  ;;  %v3877_v22 = vld [vmem:[#allocation8_spill] sm:$0xff] }
 0x289   : > { %v3303_v43 = vpop.eup %2200  ;;  %v807_v54 = vadd.f32 %v3301_v19, %v3299_v56  ;;  %v685_v13 = vsub.f32 %v3877_v22, %v3876_v0  ;;  %v3881_v0 = vld [vmem:[#allocation10_spill] sm:$0xff] }
 0x28a   : > { %v3305_v27 = vpop.eup %2202  ;;  %2206 = vpow2.f32 %v767_v5  ;;  %v723_v5 = vmul.f32 1.442695, %v686_v21  ;;  %v3882_v21 = vld [vmem:[#allocation11_spill] sm:$0xff] }
 0x28b   : > { %2208 = vpow2.f32 %v773_v52  ;;  %v813_v37 = vadd.f32 %v3305_v27, %v3303_v43 }
 0x28c   : > { %2210 = vpow2.f32 %v775_v20 }
 0x290   : > { %790 = vadd.xlane.f32.xlu1 %v789_v34  ;;  %796 = vadd.xlane.f32.xlu0 %v795_v29  ;;  %v3311_v34 = vpop.eup %2204 }
 0x291   : > { %v3313_v29 = vpop.eup %2206 }
 0x292   : > { %v3315_v60 = vpop.eup %2208  ;;  %v816_v30 = vadd.f32 %v3313_v29, %v3311_v34 }
 0x293   : > { %v3317_v44 = vpop.eup %2210 }
 0x294   : > { %v822_v62 = vadd.f32 %v3317_v44, %v3315_v60 }
 0x298   : > { %799 = vadd.xlane.f32.xlu1 %v798_v31  ;;  %805 = vadd.xlane.f32.xlu0 %v804_v35  ;;  %v721_v31 = vmul.f32 1.442695, %v685_v13 }
 0x29a   : > { %2212 = vpow2.f32 %v721_v31 }
 0x29b   : > { %2214 = vpow2.f32 %v723_v5 }
 0x2a0   : > { %808 = vadd.xlane.f32.xlu1 %v807_v54  ;;  %814 = vadd.xlane.f32.xlu0 %v813_v37  ;;  %v3879_v54 = vld [vmem:[#allocation30_spill] sm:$0xff]  ;;  %v3371_v5 = vpop.eup %2212 }
 0x2a1   : > { %v1182_v37 = vand.u32 65535, %v3879_v54 }
 0x2a3   : > { %v1184_v31 = vcvt.s32.f32 %v1182_v37 }
 0x2a8   : > { %817 = vadd.xlane.f32.xlu1 %v816_v30  ;;  %823 = vadd.xlane.f32.xlu0 %v822_v62  ;;  %v1097_v30 = vcvt.f32.s32 %v3107_v17  ;;  %v3880_v17 = vld [vmem:[#allocation17_spill] sm:$0xff] }
 0x2a9   : > { %v691_v22 = vsub.f32 %v3881_v0, %v3880_v17 }
 0x2ab   : > { %v733_v33 = vmul.f32 1.442695, %v691_v22 }
 0x2ad   : > { %2216 = vpow2.f32 %v733_v33 }
 0x2c1   : > { %v1079_v7 = vpop.xlane.xlu2 %1078 }
 0x2c2   : > { %v1080_v8 = vcvt.f32.s32 %v1079_v7  ;;  %v692_v7 = vsub.f32 %v3882_v21, %v3880_v17  ;;  %v3884_v17 = vld [vmem:[#allocation12_spill] sm:$0xff] }
 0x2c4   : > { %v1083_v35 = vadd.s32 %v1082_v39, %v1080_v8 }
 0x2c6   : > { %v1326_v52 = vpop.f32.mrf.mxu2  ;;  %v1391_v20 = vpop.f32.mrf.mxu3  ;;  %1205 = vst.msk [vmem:[%s3051_s20 + $0x40] sm:$0xff] %vm1196_vm9, %v1083_v35  ;;  %vm1229_vm7 = vcmp.eq.s32.totalorder %v2743_v9, %v1083_v35  ;;  %vm1230_vm8 = vcmp.eq.s32.totalorder %v2750_v12, %v1083_v35  ;;  %v1098_v35 = vshll.u32 %v1097_v30, 16  ;;  %v1456_v30 = vld [vmem:[%s3344_s11 + $0x8] sm:$0xff] }
 0x2c7   : > { %v1392_v62 = vadd.f32 %v1391_v20, %v1326_v52  ;;  %v2066_v47 = vsel %vm1229_vm7, 1.0, %v3868_v1  ;;  %2090 = vmatmul.msk.f32.gmra.mxu2 %vm1229_vm7, %v3867_v25  ;;  %v2067_v38 = vsel %vm1230_vm8, 1.0, %v3868_v1  ;;  %2106 = vmatmul.msk.f32.gmra.mxu3 %vm1230_vm8, %v3867_v25  ;;  %v1455_v52 = vld [vmem:[%s3344_s11] sm:$0xff]  ;;  %v1113_v20 = vcvt.f32.s32 %v3130_v26 }
 0x2c8   : > { %v3357_v13 = vmax.f32 %v1716_v28, %v2066_v47  ;;  %v3362_v3 = vmax.f32 %v1737_v49, %v2067_v38  ;;  %v735_v28 = vmul.f32 1.442695, %v692_v7  ;;  %v3883_v26 = vld [vmem:[#allocation24_spill] sm:$0xff]  ;;  %v3885_v7 = vld [vmem:[#allocation13_spill] sm:$0xff] }
 0x2c9   : > { %1439 = vst.msk [vmem:[%s3332_s29] sm:$0xff] %vm358_vm0, %v1392_v62  ;;  %v3366_v39 = vpop.xlane.xlu2 %1186  ;;  %v1095_v8 = vpop.xlane.xlu1 %1094  ;;  %v1471_v49 = vsub.f32 %v1392_v62, %v1455_v52  ;;  %v697_v0 = vsub.f32 %v3884_v17, %v3883_v26 }
 0x2ca   : > { %v1096_v24 = vcvt.f32.s32 %v1095_v8  ;;  %vm1188_vm10 = vcmp.eq.f32.partialorder %v3111_v14, %v3366_v39  ;;  %v3379_v14 = vpop.eup %2214  ;;  %2218 = vpow2.f32 %v735_v28  ;;  %v698_v8 = vsub.f32 %v3885_v7, %v3883_v26  ;;  %v3886_v28 = vld [vmem:[#allocation25_spill] sm:$0xff] }
 0x2cb   : > { %v1189_v41 = vsel %vm1188_vm10, %v1184_v31, inf  ;;  %v1487_v31 = vmul.f32 %v1471_v49, %v1471_v49  ;;  %v783_v63 = vadd.f32 %v3379_v14, %v3371_v5  ;;  %v745_v40 = vmul.f32 1.442695, %v697_v0  ;;  %v3887_v49 = vld [vmem:[#allocation15_spill] sm:$0xff] }
 0x2cc   : > { %v1099_v46 = vadd.s32 %v1098_v35, %v1096_v24  ;;  %1190 = vmin.xlane.f32.xlu2 %v1189_v41  ;;  %v1114_v24 = vshll.u32 %v1113_v20, 16 }
 0x2cd   : > { %v1503_v41 = vsel %vm358_vm0, %v1487_v31, 0.0  ;;  %2220 = vpow2.f32 %v745_v40 }
 0x2ce   : > { %1206 = vst.msk [vmem:[%s3051_s20 + $0x48] sm:$0xff] %vm1196_vm9, %v1099_v46  ;;  %v1329_v54 = vpop.f32.mrf.mxu2  ;;  %v1394_v37 = vpop.f32.mrf.mxu3  ;;  %vm1231_vm11 = vcmp.eq.s32.totalorder %v2743_v9, %v1099_v46  ;;  %vm1232_vm12 = vcmp.eq.s32.totalorder %v2750_v12, %v1099_v46 }
 0x2cf   : > { %v1395_v47 = vadd.f32 %v1394_v37, %v1329_v54  ;;  %v2068_v38 = vsel %vm1231_vm11, 1.0, %v3868_v1  ;;  %2091 = vmatmul.msk.f32.gmra.mxu2 %vm1231_vm11, %v3867_v25  ;;  %v2069_v62 = vsel %vm1232_vm12, 1.0, %v3868_v1  ;;  %2107 = vmatmul.msk.f32.gmra.mxu3 %vm1232_vm12, %v3867_v25  ;;  %v3405_v46 = vpop.eup %2216  ;;  %v703_v54 = vsub.f32 %v3887_v49, %v3886_v28 }
 0x2d0   : > { %v3390_v22 = vmax.f32 %v1717_v16, %v2068_v38  ;;  %v3395_v21 = vmax.f32 %v1738_v61, %v2069_v62  ;;  %v747_v61 = vmul.f32 1.442695, %v698_v8  ;;  %v3414_v38 = vpop.eup %2218  ;;  %v3888_v62 = vld [vmem:[#allocation16_spill] sm:$0xff]  ;;  %v1129_v8 = vcvt.f32.s32 %v3148_v53 }
 0x2d1   : > { %1440 = vst.msk [vmem:[%s3332_s29 + $0x8] sm:$0xff] %vm358_vm0, %v1395_v47  ;;  %v1472_v35 = vsub.f32 %v1395_v47, %v1456_v30  ;;  %v1111_v52 = vpop.xlane.xlu0 %1110  ;;  %v1457_v47 = vld [vmem:[%s3344_s11 + $0x10] sm:$0xff]  ;;  %v704_v26 = vsub.f32 %v3888_v62, %v3886_v28  ;;  %v3889_v62 = vld [vmem:[#allocation27_spill] sm:$0xff] }
 0x2d2   : > { %v1112_v11 = vcvt.f32.s32 %v1111_v52  ;;  %2222 = vpow2.f32 %v747_v61 }
 0x2d3   : > { %v1488_v16 = vmul.f32 %v1472_v35, %v1472_v35 }
 0x2d4   : > { %v1115_v36 = vadd.s32 %v1114_v24, %v1112_v11  ;;  %784 = vadd.xlane.f32.xlu2 %v783_v63  ;;  %v757_v24 = vmul.f32 1.442695, %v703_v54  ;;  %v792_v11 = vadd.f32 %v3414_v38, %v3405_v46  ;;  %v759_v63 = vmul.f32 1.442695, %v704_v26  ;;  %v3890_v26 = vld [vmem:[#allocation20_spill] sm:$0xff] }
 0x2d5   : > { %v1504_v33 = vsel %vm358_vm0, %v1488_v16, 0.0 }
 0x2d6   : > { %v1505_v20 = vadd.f32 %v1504_v33, %v1503_v41  ;;  %1207 = vst.msk [vmem:[%s3051_s20 + $0x50] sm:$0xff] %vm1196_vm9, %v1115_v36  ;;  %v1332_v37 = vpop.f32.mrf.mxu2  ;;  %v1397_v30 = vpop.f32.mrf.mxu3  ;;  %vm1233_vm13 = vcmp.eq.s32.totalorder %v2743_v9, %v1115_v36  ;;  %vm1234_vm14 = vcmp.eq.s32.totalorder %v2750_v12, %v1115_v36  ;;  %v1130_v36 = vshll.u32 %v1129_v8, 16 }
 0x2d7   : > { %v1398_v17 = vadd.f32 %v1397_v30, %v1332_v37  ;;  %v3419_v0 = vsel %vm1233_vm13, 1.0, %v3868_v1  ;;  %2092 = vmatmul.msk.f32.gmra.mxu2 %vm1233_vm13, %v3867_v25  ;;  %v3423_v7 = vsel %vm1234_vm14, 1.0, %v3868_v1  ;;  %2108 = vmatmul.msk.f32.gmra.mxu3 %vm1234_vm14, %v3867_v25  ;;  %v3436_v33 = vpop.eup %2220  ;;  %2224 = vpow2.f32 %v757_v24  ;;  %v1458_v37 = vld [vmem:[%s3344_s11 + $0x18] sm:$0xff] }
 0x2d8   : > { %v1720_v31 = vmax.f32 %v3357_v13, %v3419_v0  ;;  %v1741_v35 = vmax.f32 %v3362_v3, %v3423_v7  ;;  %v3439_v30 = vpop.eup %2222  ;;  %2226 = vpow2.f32 %v759_v63  ;;  %v1145_v8 = vcvt.f32.s32 %v3170_v4  ;;  %v1460_v7 = vld [vmem:[%s3344_s11 + $0x28] sm:$0xff] }
 0x2d9   : > { %1441 = vst.msk [vmem:[%s3332_s29 + $0x10] sm:$0xff] %vm358_vm0, %v1398_v17  ;;  %v1473_v52 = vsub.f32 %v1398_v17, %v1457_v47  ;;  %v709_v17 = vsub.f32 %v3890_v26, %v3889_v62 }
 0x2db   : > { %v1489_v16 = vmul.f32 %v1473_v52, %v1473_v52  ;;  %v1127_v40 = vpop.xlane.xlu1 %1126 }
 0x2dc   : > { %v1128_v53 = vcvt.f32.s32 %v1127_v40  ;;  %793 = vadd.xlane.f32.xlu2 %v792_v11  ;;  %v801_v40 = vadd.f32 %v3439_v30, %v3436_v33 }
 0x2dd   : > { %v1506_v41 = vsel %vm358_vm0, %v1489_v16, 0.0 }
 0x2de   : > { %v1507_v61 = vadd.f32 %v1506_v41, %v1505_v20  ;;  %v1131_v28 = vadd.s32 %v1130_v36, %v1128_v53  ;;  %v1335_v49 = vpop.f32.mrf.mxu2  ;;  %v1400_v54 = vpop.f32.mrf.mxu3  ;;  %v3891_v20 = vld [vmem:[#allocation21_spill] sm:$0xff] }
 0x2df   : > { %v1401_v47 = vadd.f32 %v1400_v54, %v1335_v49  ;;  %v710_v52 = vsub.f32 %v3891_v20, %v3889_v62  ;;  %v3463_v41 = vpop.eup %2224  ;;  %v1146_v49 = vshll.u32 %v1145_v8, 16 }
 0x2e0   : > { %1208 = vst.msk [vmem:[%s3051_s20 + $0x58] sm:$0xff] %vm1196_vm9, %v1131_v28  ;;  %vm1235_vm15 = vcmp.eq.s32.totalorder %v2743_v9, %v1131_v28  ;;  %vm1236_vm1 = vcmp.eq.s32.totalorder %v2750_v12, %v1131_v28  ;;  %v769_v28 = vmul.f32 1.442695, %v709_v17 }
 0x2e1   : > { %1442 = vst.msk [vmem:[%s3332_s29 + $0x18] sm:$0xff] %vm358_vm0, %v1401_v47  ;;  %v1474_v24 = vsub.f32 %v1401_v47, %v1458_v37  ;;  %v3453_v11 = vsel %vm1235_vm15, 1.0, %v3868_v1  ;;  %2093 = vmatmul.msk.f32.gmra.mxu2 %vm1235_vm15, %v3867_v25  ;;  %v2073_v63 = vsel %vm1236_vm1, 1.0, %v3868_v1  ;;  %2109 = vmatmul.msk.f32.gmra.mxu3 %vm1236_vm1, %v3867_v25  ;;  %v3465_v37 = vpop.eup %2226  ;;  %v771_v47 = vmul.f32 1.442695, %v710_v52 }
 0x2e2   : > { %v1721_v4 = vmax.f32 %v3390_v22, %v3453_v11  ;;  %v1742_v16 = vmax.f32 %v3395_v21, %v2073_v63  ;;  %v1459_v11 = vld [vmem:[%s3344_s11 + $0x20] sm:$0xff]  ;;  %2228 = vpow2.f32 %v769_v28  ;;  %v1161_v63 = vcvt.f32.s32 %v3200_v18 }
 0x2e3   : > { %v1490_v36 = vmul.f32 %v1474_v24, %v1474_v24  ;;  %v1143_v53 = vpop.xlane.xlu2 %1142  ;;  %2230 = vpow2.f32 %v771_v47 }
 0x2e4   : > { %v1144_v54 = vcvt.f32.s32 %v1143_v53  ;;  %802 = vadd.xlane.f32.xlu2 %v801_v40  ;;  %v810_v40 = vadd.f32 %v3465_v37, %v3463_v41  ;;  %v1162_v28 = vshll.u32 %v1161_v63, 16 }
 0x2e5   : > { %v1508_v22 = vsel %vm358_vm0, %v1490_v36, 0.0 }
 0x2e6   : > { %v1509_v21 = vadd.f32 %v1508_v22, %v1507_v61  ;;  %v1147_v62 = vadd.s32 %v1146_v49, %v1144_v54  ;;  %v1338_v26 = vpop.f32.mrf.mxu2  ;;  %v1403_v20 = vpop.f32.mrf.mxu3 }
 0x2e7   : > { %v1404_v24 = vadd.f32 %v1403_v20, %v1338_v26 }
 0x2e8   : > { %1209 = vst.msk [vmem:[%s3051_s20 + $0x60] sm:$0xff] %vm1196_vm9, %v1147_v62  ;;  %vm1237_vm2 = vcmp.eq.s32.totalorder %v2743_v9, %v1147_v62  ;;  %vm1238_vm3 = vcmp.eq.s32.totalorder %v2750_v12, %v1147_v62  ;;  %v3493_v13 = vpop.eup %2228  ;;  %v1177_v62 = vcvt.f32.s32 %v3233_v58 }
 0x2e9   : > { %1443 = vst.msk [vmem:[%s3332_s29 + $0x20] sm:$0xff] %vm358_vm0, %v1404_v24  ;;  %v1475_v17 = vsub.f32 %v1404_v24, %v1459_v11  ;;  %v2074_v61 = vsel %vm1237_vm2, 1.0, %v3868_v1  ;;  %2094 = vmatmul.msk.f32.gmra.mxu2 %vm1237_vm2, %v3867_v25  ;;  %v2075_v8 = vsel %vm1238_vm3, 1.0, %v3868_v1  ;;  %2110 = vmatmul.msk.f32.gmra.mxu3 %vm1238_vm3, %v3867_v25 }
 0x2ea   : > { %v3483_v18 = vmax.f32 %v1720_v31, %v2074_v61  ;;  %v3488_v52 = vmax.f32 %v1741_v35, %v2075_v8  ;;  %v3496_v35 = vpop.eup %2230  ;;  %v1178_v61 = vshll.u32 %v1177_v62, 16 }
 0x2eb   : > { %v1491_v36 = vmul.f32 %v1475_v17, %v1475_v17  ;;  %v1159_v53 = vpop.xlane.xlu0 %1158  ;;  %v819_v24 = vadd.f32 %v3496_v35, %v3493_v13 }
 0x2ec   : > { %v1160_v49 = vcvt.f32.s32 %v1159_v53  ;;  %811 = vadd.xlane.f32.xlu2 %v810_v40 }
 0x2ed   : > { %v1510_v54 = vsel %vm358_vm0, %v1491_v36, 0.0 }
 0x2ee   : > { %v1511_v0 = vadd.f32 %v1510_v54, %v1509_v21  ;;  %v1163_v31 = vadd.s32 %v1162_v28, %v1160_v49  ;;  %v1341_v47 = vpop.f32.mrf.mxu2  ;;  %v1406_v3 = vpop.f32.mrf.mxu3  ;;  %v1461_v54 = vld [vmem:[%s3344_s11 + $0x30] sm:$0xff] }
 0x2ef   : > { %v1407_v22 = vadd.f32 %v1406_v3, %v1341_v47 }
 0x2f0   : > { %1210 = vst.msk [vmem:[%s3051_s20 + $0x68] sm:$0xff] %vm1196_vm9, %v1163_v31  ;;  %vm1239_vm4 = vcmp.eq.s32.totalorder %v2743_v9, %v1163_v31  ;;  %vm1240_vm5 = vcmp.eq.s32.totalorder %v2750_v12, %v1163_v31 }
 0x2f1   : > { %1444 = vst.msk [vmem:[%s3332_s29 + $0x28] sm:$0xff] %vm358_vm0, %v1407_v22  ;;  %v1476_v26 = vsub.f32 %v1407_v22, %v1460_v7  ;;  %v2076_v21 = vsel %vm1239_vm4, 1.0, %v3868_v1  ;;  %2095 = vmatmul.msk.f32.gmra.mxu2 %vm1239_vm4, %v3867_v25  ;;  %v2077_v20 = vsel %vm1240_vm5, 1.0, %v3868_v1  ;;  %2111 = vmatmul.msk.f32.gmra.mxu3 %vm1240_vm5, %v3867_v25 }
 0x2f2   : > { %v3509_v58 = vmax.f32 %v1721_v4, %v2076_v21  ;;  %v3511_v11 = vmax.f32 %v1742_v16, %v2077_v20  ;;  %v1462_v20 = vld [vmem:[%s3344_s11 + $0x38] sm:$0xff] }
 0x2f3   : > { %v1492_v63 = vmul.f32 %v1476_v26, %v1476_v26  ;;  %v1175_v17 = vpop.xlane.xlu1 %1174 }
 0x2f4   : > { %v1176_v8 = vcvt.f32.s32 %v1175_v17  ;;  %820 = vadd.xlane.f32.xlu2 %v819_v24 }
 0x2f5   : > { %v1512_v40 = vsel %vm358_vm0, %v1492_v63, 0.0 }
 0x2f6   : > { %v1513_v36 = vadd.f32 %v1512_v40, %v1511_v0  ;;  %v1179_v53 = vadd.s32 %v1178_v61, %v1176_v8  ;;  %v1344_v28 = vpop.f32.mrf.mxu2  ;;  %v1409_v49 = vpop.f32.mrf.mxu3 }
 0x2f7   : > { %v1410_v4 = vadd.f32 %v1409_v49, %v1344_v28  ;;  %v779_v40 = vpop.xlane.xlu0 %778 }
 0x2f8   : > { %1211 = vst.msk [vmem:[%s3051_s20 + $0x70] sm:$0xff] %vm1196_vm9, %v1179_v53  ;;  %vm1241_vm6 = vcmp.eq.s32.totalorder %v2743_v9, %v1179_v53  ;;  %vm1242_vm7 = vcmp.eq.s32.totalorder %v2750_v12, %v1179_v53  ;;  %2232 = vrcp.f32 %v779_v40 }
 0x2f9   : > { %1445 = vst.msk [vmem:[%s3332_s29 + $0x30] sm:$0xff] %vm358_vm0, %v1410_v4  ;;  %v1477_v16 = vsub.f32 %v1410_v4, %v1461_v54  ;;  %v2078_v31 = vsel %vm1241_vm6, 1.0, %v3868_v1  ;;  %2096 = vmatmul.msk.f32.gmra.mxu2 %vm1241_vm6, %v3867_v25  ;;  %v2079_v0 = vsel %vm1242_vm7, 1.0, %v3868_v1  ;;  %2112 = vmatmul.msk.f32.gmra.mxu3 %vm1242_vm7, %v3867_v25  ;;  %v1193_v54 = vcvt.f32.s32 %v3366_v39 }
 0x2fa   : > { %v1724_v47 = vmax.f32 %v3483_v18, %v2078_v31  ;;  %v1745_v3 = vmax.f32 %v3488_v52, %v2079_v0 }
 0x2fb   : > { %v1493_v7 = vmul.f32 %v1477_v16, %v1477_v16  ;;  %v782_v18 = vpop.xlane.xlu1 %781 }
 0x2fc   : > { %2234 = vrcp.f32 %v782_v18 }
 0x2fd   : > { %v1514_v22 = vsel %vm358_vm0, %v1493_v7, 0.0 }
 0x2fe   : > { %v1515_v62 = vadd.f32 %v1514_v22, %v1513_v36  ;;  %v1347_v26 = vpop.f32.mrf.mxu2  ;;  %v1412_v21 = vpop.f32.mrf.mxu3  ;;  %v1194_v22 = vshll.u32 %v1193_v54, 16 }
 0x2ff   : > { %v1413_v24 = vadd.f32 %v1412_v21, %v1347_v26  ;;  %v2233_v52 = vpop.eup %2232  ;;  %v788_v53 = vpop.xlane.xlu0 %787 }
 0x300   : > { %v841_v36 = vmul.f32 %v2233_v52, %v3205_v57  ;;  %v842_v28 = vmul.f32 %v2233_v52, %v3213_v15  ;;  %2236 = vrcp.f32 %v788_v53 }
 0x301   : > { %1446 = vst.msk [vmem:[%s3332_s29 + $0x38] sm:$0xff] %vm358_vm0, %v1413_v24  ;;  %v1478_v63 = vsub.f32 %v1413_v24, %v1462_v20 }
 0x302   : > { %v2235_v49 = vpop.eup %2234  ;;  %v1543_v4 = vadd.f32 1e-08, %v841_v36  ;;  %v1544_v16 = vadd.f32 1e-08, %v842_v28 }
 0x303   : > { %v1494_v17 = vmul.f32 %v1478_v63, %v1478_v63  ;;  %v3540_v31 = vmul.f32 %v2235_v49, %v3239_v45  ;;  %v791_v26 = vpop.xlane.xlu1 %790  ;;  %v3554_v45 = vmul.f32 %v2235_v49, %v3241_v48 }
 0x304   : > { %2238 = vlog2.f32 %v1543_v4  ;;  %v1463_v4 = vld [vmem:[%s3344_s11 + $0x40] sm:$0xff] }
 0x305   : > { %v1516_v61 = vsel %vm358_vm0, %v1494_v17, 0.0  ;;  %2240 = vlog2.f32 %v1544_v16  ;;  %v1545_v21 = vadd.f32 1e-08, %v3540_v31 }
 0x306   : > { %v3534_v8 = vadd.f32 %v1516_v61, %v1515_v62  ;;  %v2237_v7 = vpop.eup %2236  ;;  %2242 = vrcp.f32 %v791_v26 }
 0x307   : > { %v3543_v15 = vmul.f32 %v2237_v7, %v3243_v32  ;;  %v3547_v39 = vmul.f32 %v2237_v7, %v3247_v55  ;;  %2244 = vlog2.f32 %v1545_v21  ;;  %v797_v48 = vpop.xlane.xlu0 %796 }
 0x309   : > { %v1550_v40 = vadd.f32 1e-08, %v3547_v39 }
 0x30a   : > { %v2239_v55 = vpop.eup %2238 }
 0x30b   : > { %v2241_v17 = vpop.eup %2240 }
 0x30c   : > { %v1578_v53 = vmul.f32 0.6931472, %v2241_v17  ;;  %v2243_v16 = vpop.eup %2242 }
 0x30d   : > { %v3569_v21 = vmul.f32 %v2243_v16, %v3259_v42 }
 0x33f   : > { %v1191_v0 = vpop.xlane.xlu2 %1190 }
 0x340   : > { %v1192_v62 = vcvt.f32.s32 %v1191_v0 }
 0x342   : > { %v1195_v57 = vadd.s32 %v1194_v22, %v1192_v62 }
 0x344   : > { %1212 = vst.msk [vmem:[%s3051_s20 + $0x78] sm:$0xff] %vm1196_vm9, %v1195_v57  ;;  %vm1243_vm8 = vcmp.eq.s32.totalorder %v2743_v9, %v1195_v57  ;;  %vm1244_vm10 = vcmp.eq.s32.totalorder %v2750_v12, %v1195_v57  ;;  %v1549_v12 = vadd.f32 1e-08, %v3543_v15  ;;  %v1640_v57 = vmul.f32 %v1578_v53, %v842_v28  ;;  %s1810_s20 = sshll.u32 %s1806_s18, 4  ;;  %s1811_s20 = int_to_ptr.hbm [resolvable:$true] %s1810_s20 }
 0x345   : > { %v2080_v20 = vsel %vm1243_vm8, 1.0, %v3868_v1  ;;  %2097 = vmatmul.msk.f32.gmra.mxu2 %vm1243_vm8, %v3867_v25  ;;  %v2081_v32 = vsel %vm1244_vm10, 1.0, %v3868_v1  ;;  %2113 = vmatmul.msk.f32.gmra.mxu3 %vm1244_vm10, %v3867_v25  ;;  %v1576_v1 = vmul.f32 0.6931472, %v2239_v55  ;;  %v1546_v25 = vadd.f32 1e-08, %v3554_v45 }
 0x346   : > { %v1725_v24 = vmax.f32 %v3509_v58, %v2080_v20  ;;  %v1746_v63 = vmax.f32 %v3511_v11, %v2081_v32  ;;  %v800_v20 = vpop.xlane.xlu1 %799  ;;  %vm1757_vm9 = vcmask 1040384   ;;  %s2342_s28 = sshra.s32 %s1811_s20, 4  ;;  %s2343_s28 = int_to_ptr.hbm [resolvable:$true] %s2342_s28 }
 0x347   : > { %v785_v61 = vpop.xlane.xlu2 %784  ;;  %p2349_p0 = scmp.lt.s32.totalorder %s2343_s28, %s3803_s5 }
 0x348   : > { %v1726_v18 = vmax.f32 %v1724_v47, %v1725_v24  ;;  %v1747_v52 = vmax.f32 %v1745_v3, %v1746_v63  ;;  %2246 = vrcp.f32 %v785_v61  ;;  %v2245_v47 = vpop.eup %2244  ;;  %v1639_v3 = vmul.f32 %v1576_v1, %v841_v36 }
 0x349   : > { %2248 = vrcp.f32 %v797_v48  ;;  %v3572_v24 = vmul.f32 %v2243_v16, %v3261_v6  ;;  %v1580_v28 = vmul.f32 0.6931472, %v2245_v47 }
 0x34a   : > { %v1727_v58 = vrot.slane %v1726_v18, 4  ;;  %v1748_v11 = vrot.slane %v1747_v52, 4  ;;  %v1350_v49 = vpop.f32.mrf.mxu2  ;;  %v1415_v54 = vpop.f32.mrf.mxu3  ;;  %2250 = vlog2.f32 %v1549_v12 }
 0x34b   : > { %v1416_v0 = vadd.f32 %v1415_v54, %v1350_v49  ;;  %2252 = vlog2.f32 %v1550_v40  ;;  %v1464_v49 = vld [vmem:[%s3344_s11 + $0x48] sm:$0xff] }
 0x34c   : > { %v1728_v7 = vmax.f32 %v1726_v18, %v1727_v58  ;;  %v1749_v22 = vmax.f32 %v1747_v52, %v1748_v11  ;;  %2254 = vlog2.f32 %v1546_v25  ;;  %v1551_v52 = vadd.f32 1e-08, %v3569_v21 }
 0x34d   : > { %1447 = vst.msk [vmem:[%s3332_s29 + $0x40] sm:$0xff] %vm358_vm0, %v1416_v0  ;;  %v1479_v62 = vsub.f32 %v1416_v0, %v1463_v4  ;;  %v1671_v4 = vadd.f32 %v1640_v57, %v1639_v3  ;;  %v1641_v0 = vmul.f32 %v1580_v28, %v3540_v31 }
 0x34e   : > { %v2247_v26 = vpop.eup %2246  ;;  %v1729_v32 = vrot.slane %v1728_v7, 2  ;;  %v1750_v55 = vrot.slane %v1749_v22, 2 }
 0x34f   : > { %v3575_v63 = vmul.f32 %v2247_v26, %v3371_v5  ;;  %v3578_v36 = vmul.f32 %v2247_v26, %v3379_v14  ;;  %v1495_v17 = vmul.f32 %v1479_v62, %v1479_v62  ;;  %v794_v12 = vpop.xlane.xlu2 %793  ;;  %v2249_v48 = vpop.eup %2248  ;;  %v1672_v28 = vadd.f32 %v1671_v4, %v1641_v0 }
 0x350   : > { %v1730_v61 = vmax.f32 %v1728_v7, %v1729_v32  ;;  %v1751_v42 = vmax.f32 %v1749_v22, %v1750_v55  ;;  %2256 = vrcp.f32 %v794_v12  ;;  %v3580_v40 = vpop.eup %2250  ;;  %v3595_v7 = vmul.f32 %v2249_v48, %v3263_v51  ;;  %v806_v51 = vpop.xlane.xlu0 %805 }
 0x351   : > { %2258 = vrcp.f32 %v800_v20  ;;  %v1547_v6 = vadd.f32 1e-08, %v3575_v63  ;;  %v1548_v18 = vadd.f32 1e-08, %v3578_v36  ;;  %v1518_v5 = vsel %vm358_vm0, %v1495_v17, 0.0  ;;  %v3588_v14 = vpop.eup %2252  ;;  %v809_v4 = vpop.xlane.xlu1 %808 }
 0x352   : > { %v1731_v1 = vrot.slane %v1730_v61, 1  ;;  %v1752_v25 = vrot.slane %v1751_v42, 1  ;;  %v1519_v53 = vadd.f32 %v1518_v5, %v3534_v8  ;;  %v1353_v58 = vpop.f32.mrf.mxu2  ;;  %v1418_v11 = vpop.f32.mrf.mxu3  ;;  %v3599_v47 = vmul.f32 %v2249_v48, %v3267_v23 }
 0x353   : > { %v2255_v54 = vpop.eup %2254  ;;  %2260 = vlog2.f32 %v1547_v6  ;;  %v1419_v16 = vadd.f32 %v1418_v11, %v1353_v58  ;;  %v1552_v8 = vadd.f32 1e-08, %v3572_v24  ;;  %v3892_v12 = vlaneseq }
 0x354   : > { %2262 = vlog2.f32 %v1548_v18  ;;  %v1753_v22 = vmax.f32 %v1751_v42, %v1752_v25  ;;  %v1582_v26 = vmul.f32 0.6931472, %v2255_v54  ;;  %v1732_v57 = vmax.f32 %v1730_v61, %v1731_v1 }
 0x355   : > { %1448 = vst.msk [vmem:[%s3332_s29 + $0x48] sm:$0xff] %vm358_vm0, %v1419_v16  ;;  %v1480_v62 = vsub.f32 %v1419_v16, %v1464_v49  ;;  %2264 = vlog2.f32 %v1551_v52  ;;  %vm3611_vm11 = vcmp.lt.s32.totalorder %v3892_v12, 256  ;;  %v1555_v61 = vadd.f32 1e-08, %v3595_v7  ;;  %v1465_v49 = vld [vmem:[%s3344_s11 + $0x50] sm:$0xff] }
 0x356   : > { %v2257_v3 = vpop.eup %2256  ;;  %v1756_v31 = vrot.slane %v1753_v22, 7  ;;  %v1642_v52 = vmul.f32 %v1582_v26, %v3554_v45 }
 0x357   : > { %v2259_v20 = vpop.eup %2258  ;;  %v3605_v32 = vmul.f32 %v2257_v3, %v3405_v46  ;;  %v3608_v55 = vmul.f32 %v2257_v3, %v3414_v38  ;;  %v1496_v23 = vmul.f32 %v1480_v62, %v1480_v62  ;;  %v803_v17 = vpop.xlane.xlu2 %802  ;;  %v1590_v3 = vmul.f32 0.6931472, %v3588_v14 }
 0x358   : > { %2266 = vrcp.f32 %v803_v17  ;;  %v1758_v42 = vsel %vm1757_vm9, %v1732_v57, %v1756_v31  ;;  %v3630_v54 = vmul.f32 %v2259_v20, %v3279_v50  ;;  %v1673_v22 = vadd.f32 %v1672_v28, %v1642_v52 }
 0x359   : > { %v2261_v46 = vpop.eup %2260  ;;  %2268 = vlog2.f32 %v1552_v8  ;;  %v1553_v38 = vadd.f32 1e-08, %v3605_v32  ;;  %v1554_v6 = vadd.f32 1e-08, %v3608_v55  ;;  %v1520_v18 = vsel %vm358_vm0, %v1496_v23, 0.0 }
 0x35a   : > { %v2263_v5 = vpop.eup %2262  ;;  %2270 = vrcp.f32 %v806_v51  ;;  %v1584_v1 = vmul.f32 0.6931472, %v2261_v46  ;;  %v1521_v25 = vadd.f32 %v1520_v18, %v1519_v53  ;;  %v1356_v58 = vpop.f32.mrf.mxu2  ;;  %1764 = vst.msk [vmem:[%s3624_s14] sm:$0x3] %vm3611_vm11, %v1758_v42  ;;  %v1588_v53 = vmul.f32 0.6931472, %v3580_v40 }
 0x35b   : > { %v1421_v11 = vpop.f32.mrf.mxu3  ;;  %v1586_v16 = vmul.f32 0.6931472, %v2263_v5  ;;  %2272 = vlog2.f32 %v1553_v38  ;;  %v2265_v0 = vpop.eup %2264  ;;  %v1556_v8 = vadd.f32 1e-08, %v3599_v47  ;;  %v3637_v26 = vmul.f32 %v2259_v20, %v3281_v10 }
 0x35c   : > { %v1422_v45 = vadd.f32 %v1421_v11, %v1356_v58  ;;  %v1643_v62 = vmul.f32 %v1584_v1, %v3575_v63  ;;  %2274 = vlog2.f32 %v1554_v6  ;;  %v1557_v23 = vadd.f32 1e-08, %v3630_v54  ;;  %v815_v5 = vpop.xlane.xlu0 %814 }
 0x35d   : > { %2276 = vrcp.f32 %v809_v4  ;;  %v1644_v31 = vmul.f32 %v1586_v16, %v3578_v36  ;;  %v1645_v20 = vmul.f32 %v1588_v53, %v3543_v15  ;;  %v1592_v12 = vmul.f32 0.6931472, %v2265_v0  ;;  %v1466_v4 = vld [vmem:[%s3344_s11 + $0x58] sm:$0xff] }
 0x35e   : > { %1449 = vst.msk [vmem:[%s3332_s29 + $0x50] sm:$0xff] %vm358_vm0, %v1422_v45  ;;  %v1481_v50 = vsub.f32 %v1422_v45, %v1465_v49  ;;  %v2267_v57 = vpop.eup %2266  ;;  %v1674_v51 = vadd.f32 %v1673_v22, %v1643_v62  ;;  %2278 = vlog2.f32 %v1555_v61  ;;  %v1646_v42 = vmul.f32 %v1590_v3, %v3547_v39  ;;  %v818_v3 = vpop.xlane.xlu1 %817 }
 0x35f   : > { %v2269_v40 = vpop.eup %2268  ;;  %v3644_v63 = vmul.f32 %v2267_v57, %v3436_v33  ;;  %v812_v17 = vpop.xlane.xlu2 %811  ;;  %2280 = vlog2.f32 %v1556_v8  ;;  %v1558_v36 = vadd.f32 1e-08, %v3637_v26  ;;  %v3650_v61 = vmul.f32 %v2267_v57, %v3439_v30 }
 0x360   : > { %v1497_v14 = vmul.f32 %v1481_v50, %v1481_v50  ;;  %v2271_v10 = vpop.eup %2270  ;;  %v1675_v48 = vadd.f32 %v1674_v51, %v1644_v31  ;;  %v1594_v33 = vmul.f32 0.6931472, %v2269_v40  ;;  %2282 = vrcp.f32 %v812_v17 }
 0x361   : > { %v2273_v28 = vpop.eup %2272  ;;  %v3654_v15 = vmul.f32 %v2271_v10, %v3283_v59  ;;  %2284 = vlog2.f32 %v1557_v23  ;;  %v1559_v39 = vadd.f32 1e-08, %v3644_v63  ;;  %v1647_v1 = vmul.f32 %v1592_v12, %v3569_v21 }
 0x362   : > { %v1522_v46 = vsel %vm358_vm0, %v1497_v14, 0.0  ;;  %v1676_v38 = vadd.f32 %v1675_v48, %v1645_v20  ;;  %v2275_v18 = vpop.eup %2274  ;;  %v1596_v58 = vmul.f32 0.6931472, %v2273_v28  ;;  %2286 = vlog2.f32 %v1558_v36 }
 0x363   : > { %v1523_v6 = vadd.f32 %v1522_v46, %v1521_v25  ;;  %v2277_v52 = vpop.eup %2276  ;;  %v3660_v25 = vmul.f32 %v2271_v10, %v3287_v2  ;;  %v1560_v59 = vadd.f32 1e-08, %v3650_v61  ;;  %v1648_v53 = vmul.f32 %v1594_v33, %v3572_v24 }
 0x364   : > { %v1677_v30 = vadd.f32 %v1676_v38, %v1646_v42  ;;  %v1359_v11 = vpop.f32.mrf.mxu2  ;;  %v1424_v49 = vpop.f32.mrf.mxu3  ;;  %2288 = vrcp.f32 %v815_v5  ;;  %v1598_v22 = vmul.f32 0.6931472, %v2275_v18  ;;  %v1561_v8 = vadd.f32 1e-08, %v3654_v15 }
 0x365   : > { %v2279_v16 = vpop.eup %2278  ;;  %v1425_v45 = vadd.f32 %v1424_v49, %v1359_v11  ;;  %v3666_v62 = vmul.f32 %v2277_v52, %v3299_v56  ;;  %2290 = vlog2.f32 %v1559_v39  ;;  %v1649_v31 = vmul.f32 %v1596_v58, %v3605_v32  ;;  %v824_v11 = vpop.xlane.xlu0 %823 }
 0x366   : > { %v2281_v0 = vpop.eup %2280  ;;  %v1678_v21 = vadd.f32 %v1677_v30, %v1647_v1  ;;  %v1600_v57 = vmul.f32 0.6931472, %v2279_v16  ;;  %v1562_v24 = vadd.f32 1e-08, %v3660_v25  ;;  %v3673_v23 = vmul.f32 %v2277_v52, %v3301_v19 }
 0x367   : > { %1450 = vst.msk [vmem:[%s3332_s29 + $0x58] sm:$0xff] %vm358_vm0, %v1425_v45  ;;  %v1482_v2 = vsub.f32 %v1425_v45, %v1466_v4  ;;  %v2283_v50 = vpop.eup %2282  ;;  %2292 = vlog2.f32 %v1560_v59  ;;  %v1602_v56 = vmul.f32 0.6931472, %v2281_v0  ;;  %v1650_v17 = vmul.f32 %v1598_v22, %v3608_v55  ;;  %v821_v28 = vpop.xlane.xlu2 %820  ;;  %v1467_v55 = vld [vmem:[%s3344_s11 + $0x60] sm:$0xff] }
 0x368   : > { %v1679_v51 = vadd.f32 %v1678_v21, %v1648_v53  ;;  %v2285_v40 = vpop.eup %2284  ;;  %2294 = vrcp.f32 %v818_v3  ;;  %v1563_v12 = vadd.f32 1e-08, %v3666_v62  ;;  %v3678_v32 = vmul.f32 %v2283_v50, %v3463_v41 }
 0x369   : > { %v1498_v14 = vmul.f32 %v1482_v2, %v1482_v2  ;;  %v2287_v20 = vpop.eup %2286  ;;  %2296 = vlog2.f32 %v1561_v8  ;;  %v1651_v42 = vmul.f32 %v1600_v57, %v3595_v7  ;;  %v1604_v36 = vmul.f32 0.6931472, %v2285_v40 }
 0x36a   : > { %v1680_v10 = vadd.f32 %v1679_v51, %v1649_v31  ;;  %v2289_v19 = vpop.eup %2288  ;;  %2298 = vlog2.f32 %v1562_v24  ;;  %v1564_v39 = vadd.f32 1e-08, %v3673_v23  ;;  %v3685_v41 = vmul.f32 %v2283_v50, %v3465_v37 }
 0x36b   : > { %v1524_v48 = vsel %vm358_vm0, %v1498_v14, 0.0  ;;  %v2291_v5 = vpop.eup %2290  ;;  %v1652_v1 = vmul.f32 %v1602_v56, %v3599_v47  ;;  %v1606_v30 = vmul.f32 0.6931472, %v2287_v20  ;;  %2300 = vrcp.f32 %v821_v28  ;;  %v1468_v14 = vld [vmem:[%s3344_s11 + $0x68] sm:$0xff] }
 0x36c   : > { %v1681_v46 = vadd.f32 %v1680_v10, %v1650_v17  ;;  %v1525_v33 = vadd.f32 %v1524_v48, %v1523_v6  ;;  %v1362_v38 = vpop.f32.mrf.mxu2  ;;  %v1427_v18 = vpop.f32.mrf.mxu3  ;;  %v3689_v6 = vmul.f32 %v2289_v19, %v3303_v43  ;;  %2302 = vlog2.f32 %v1563_v12 }
 0x36d   : > { %v1428_v52 = vadd.f32 %v1427_v18, %v1362_v38  ;;  %v2293_v7 = vpop.eup %2292  ;;  %v1565_v49 = vadd.f32 1e-08, %v3678_v32  ;;  %v1653_v37 = vmul.f32 %v1604_v36, %v3630_v54  ;;  %v1608_v45 = vmul.f32 0.6931472, %v2291_v5 }
 0x36e   : > { %v1682_v58 = vadd.f32 %v1681_v46, %v1651_v42  ;;  %v2295_v16 = vpop.eup %2294  ;;  %v3696_v0 = vmul.f32 %v2289_v19, %v3305_v27  ;;  %2304 = vlog2.f32 %v1564_v39  ;;  %v1566_v43 = vadd.f32 1e-08, %v3685_v41 }
 0x36f   : > { %1451 = vst.msk [vmem:[%s3332_s29 + $0x60] sm:$0xff] %vm358_vm0, %v1428_v52  ;;  %v1483_v4 = vsub.f32 %v1428_v52, %v1467_v55  ;;  %v2297_v47 = vpop.eup %2296  ;;  %v1654_v22 = vmul.f32 %v1606_v30, %v3637_v26  ;;  %2306 = vrcp.f32 %v824_v11  ;;  %v1610_v21 = vmul.f32 0.6931472, %v2293_v7 }
 0x370   : > { %v1683_v59 = vadd.f32 %v1682_v58, %v1652_v1  ;;  %v2299_v3 = vpop.eup %2298  ;;  %v1567_v2 = vadd.f32 1e-08, %v3689_v6  ;;  %v3702_v54 = vmul.f32 %v2295_v16, %v3311_v34  ;;  %2308 = vlog2.f32 %v1565_v49 }
 0x371   : > { %v1499_v53 = vmul.f32 %v1483_v4, %v1483_v4  ;;  %v2301_v50 = vpop.eup %2300  ;;  %v1612_v57 = vmul.f32 0.6931472, %v2297_v47  ;;  %v1655_v31 = vmul.f32 %v1608_v45, %v3644_v63  ;;  %v1568_v17 = vadd.f32 1e-08, %v3696_v0  ;;  %v1469_v4 = vld [vmem:[%s3344_s11 + $0x70] sm:$0xff] }
 0x372   : > { %v1684_v8 = vadd.f32 %v1683_v59, %v1653_v37  ;;  %v2303_v56 = vpop.eup %2302  ;;  %v3709_v10 = vmul.f32 %v2295_v16, %v3313_v29  ;;  %2310 = vlog2.f32 %v1566_v43  ;;  %v1614_v20 = vmul.f32 0.6931472, %v2299_v3 }
 0x373   : > { %v1526_v27 = vsel %vm358_vm0, %v1499_v53, 0.0  ;;  %v1656_v12 = vmul.f32 %v1610_v21, %v3650_v61  ;;  %2312 = vlog2.f32 %v1567_v2  ;;  %v1569_v63 = vadd.f32 1e-08, %v3702_v54 }
 0x374   : > { %v1685_v51 = vadd.f32 %v1684_v8, %v1654_v22  ;;  %v1527_v40 = vadd.f32 %v1526_v27, %v1525_v33  ;;  %v1365_v26 = vpop.f32.mrf.mxu2  ;;  %v1430_v24 = vpop.f32.mrf.mxu3  ;;  %v3714_v19 = vmul.f32 %v2301_v50, %v3493_v13  ;;  %v1657_v29 = vmul.f32 %v1612_v57, %v3654_v15 }
 0x375   : > { %v1431_v34 = vadd.f32 %v1430_v24, %v1365_v26  ;;  %v2305_v28 = vpop.eup %2304  ;;  %v1616_v46 = vmul.f32 0.6931472, %v2303_v56  ;;  %2314 = vlog2.f32 %v1568_v17  ;;  %v1570_v61 = vadd.f32 1e-08, %v3709_v10 }
 0x376   : > { %v1686_v48 = vadd.f32 %v1685_v51, %v1655_v31  ;;  %v2307_v36 = vpop.eup %2306  ;;  %v3721_v18 = vmul.f32 %v2301_v50, %v3496_v35  ;;  %v1658_v13 = vmul.f32 %v1614_v20, %v3660_v25  ;;  %v1618_v5 = vmul.f32 0.6931472, %v2305_v28 }
 0x377   : > { %1452 = vst.msk [vmem:[%s3332_s29 + $0x68] sm:$0xff] %vm358_vm0, %v1431_v34  ;;  %v1484_v42 = vsub.f32 %v1431_v34, %v1468_v14  ;;  %v2309_v38 = vpop.eup %2308  ;;  %v871_v1 = vmul.f32 %v2307_v36, %v3315_v60  ;;  %2316 = vlog2.f32 %v1569_v63  ;;  %v1571_v15 = vadd.f32 1e-08, %v3714_v19 }
 0x378   : > { %v1687_v33 = vadd.f32 %v1686_v48, %v1656_v12  ;;  %v2311_v52 = vpop.eup %2310  ;;  %v1659_v58 = vmul.f32 %v1616_v46, %v3666_v62  ;;  %v1620_v11 = vmul.f32 0.6931472, %v2309_v38  ;;  %2318 = vlog2.f32 %v1570_v61 }
 0x379   : > { %v1500_v55 = vmul.f32 %v1484_v42, %v1484_v42  ;;  %v2313_v25 = vpop.eup %2312  ;;  %v1572_v37 = vadd.f32 1e-08, %v3721_v18  ;;  %v872_v60 = vmul.f32 %v2307_v36, %v3317_v44  ;;  %v1660_v45 = vmul.f32 %v1618_v5, %v3673_v23 }
 0x37a   : > { %v1688_v39 = vadd.f32 %v1687_v33, %v1657_v29  ;;  %v1622_v47 = vmul.f32 0.6931472, %v2311_v52  ;;  %v1573_v62 = vadd.f32 1e-08, %v871_v1  ;;  %2320 = vlog2.f32 %v1571_v15  ;;  %v1470_v15 = vld [vmem:[%s3344_s11 + $0x78] sm:$0xff]  ;;  %s2348_s11 = scalar_lea.hbm %s3803_s5, 8 }
 0x37b   : > { %v1528_v30 = vsel %vm358_vm0, %v1500_v55, 0.0  ;;  %v2315_v53 = vpop.eup %2314  ;;  %v1624_v21 = vmul.f32 0.6931472, %v2313_v25  ;;  %v1661_v8 = vmul.f32 %v1620_v11, %v3678_v32  ;;  %2322 = vlog2.f32 %v1572_v37 }
 0x37c   : > { %v1689_v7 = vadd.f32 %v1688_v39, %v1658_v13  ;;  %v1368_v35 = vpop.f32.mrf.mxu2  ;;  %v1433_v49 = vpop.f32.mrf.mxu3  ;;  %v1529_v16 = vadd.f32 %v1528_v30, %v1527_v40  ;;  %v1574_v50 = vadd.f32 1e-08, %v872_v60  ;;  %v1626_v57 = vmul.f32 0.6931472, %v2315_v53 }
 0x37d   : > { %v1434_v59 = vadd.f32 %v1433_v49, %v1368_v35  ;;  %v2317_v2 = vpop.eup %2316  ;;  %v1662_v44 = vmul.f32 %v1622_v47, %v3685_v41  ;;  %2324 = vlog2.f32 %v1573_v62  ;;  %v1663_v40 = vmul.f32 %v1624_v21, %v3689_v6 }
 0x37e   : > { %v1690_v43 = vadd.f32 %v1689_v7, %v1659_v58  ;;  %v2319_v31 = vpop.eup %2318  ;;  %v1628_v26 = vmul.f32 0.6931472, %v2317_v2  ;;  %2326 = vlog2.f32 %v1574_v50  ;;  %v1664_v32 = vmul.f32 %v1626_v57, %v3696_v0 }
 0x37f   : > { %1453 = vst.msk [vmem:[%s3332_s29 + $0x70] sm:$0xff] %vm358_vm0, %v1434_v59  ;;  %v1485_v22 = vsub.f32 %v1434_v59, %v1469_v4  ;;  %v1630_v17 = vmul.f32 0.6931472, %v2319_v31 }
 0x380   : > { %v1691_v3 = vadd.f32 %v1690_v43, %v1660_v45  ;;  %v2321_v56 = vpop.eup %2320  ;;  %v1665_v12 = vmul.f32 %v1628_v26, %v3702_v54 }
 0x381   : > { %v1501_v27 = vmul.f32 %v1485_v22, %v1485_v22  ;;  %v2323_v20 = vpop.eup %2322  ;;  %v1632_v41 = vmul.f32 0.6931472, %v2321_v56  ;;  %v1666_v63 = vmul.f32 %v1630_v17, %v3709_v10 }
 0x382   : > { %v1692_v23 = vadd.f32 %v1691_v3, %v1661_v8  ;;  %v1634_v42 = vmul.f32 0.6931472, %v2323_v20 }
 0x383   : > { %v1530_v51 = vsel %vm358_vm0, %v1501_v27, 0.0  ;;  %v2325_v28 = vpop.eup %2324  ;;  %v1667_v46 = vmul.f32 %v1632_v41, %v3714_v19 }
 0x384   : > { %v1693_v24 = vadd.f32 %v1692_v23, %v1662_v44  ;;  %v1531_v14 = vadd.f32 %v1530_v51, %v1529_v16  ;;  %v2327_v6 = vpop.eup %2326  ;;  %v1636_v29 = vmul.f32 0.6931472, %v2325_v28  ;;  %v1668_v38 = vmul.f32 %v1634_v42, %v3721_v18 }
 0x385   : > { %v1638_v0 = vmul.f32 0.6931472, %v2327_v6 }
 0x386   : > { %v1694_v34 = vadd.f32 %v1693_v24, %v1663_v40  ;;  %v1669_v55 = vmul.f32 %v1636_v29, %v871_v1 }
 0x387   : > { %v1670_v13 = vmul.f32 %v1638_v0, %v872_v60 }
 0x388   : > { %v1695_v48 = vadd.f32 %v1694_v34, %v1664_v32 }
 0x38a   : > { %v1696_v36 = vadd.f32 %v1695_v48, %v1665_v12 }
 0x38c   : > { %v1697_v33 = vadd.f32 %v1696_v36, %v1666_v63 }
 0x38e   : > { %v1698_v61 = vadd.f32 %v1697_v33, %v1667_v46 }
 0x390   : > { %v1699_v54 = vadd.f32 %v1698_v61, %v1668_v38 }
 0x392   : > { %v1700_v5 = vadd.f32 %v1699_v54, %v1669_v55 }
 0x394   : > { %v1701_v10 = vadd.f32 %v1700_v5, %v1670_v13 }
 0x396   : > { %1702 = vadd.xlane.f32.xlu2 %v1701_v10 }
 0x3c8   : > { %v1371_v39 = vpop.f32.mrf.mxu2  ;;  %v1436_v52 = vpop.f32.mrf.mxu3 }
 0x3c9   : > { %v1437_v30 = vadd.f32 %v1436_v52, %v1371_v39 }
 0x3cb   : > { %1454 = vst.msk [vmem:[%s3332_s29 + $0x78] sm:$0xff] %vm358_vm0, %v1437_v30  ;;  %v1486_v19 = vsub.f32 %v1437_v30, %v1470_v15  ;;  %s2344_s29 = scalar_lea.hbm %s2343_s28, 2 }
 0x3cc   : > { %p2345_p11 = scmp.ne.s32.totalorder %s2343_s28, %s2344_s29  ;;  %p2350_p1 = scmp.lt.s32.totalorder %s2348_s11, %s2344_s29 }
 0x3cd   : > { %v1502_v58 = vmul.f32 %v1486_v19, %v1486_v19 }
 0x3ce   : > { %p2346_p12 = pnand %p2345_p11, %p2499_p5  ;;  %p2351_p2 = por %p2350_p1, %p2349_p0 }
 0x3cf   : > { %v1532_v18 = vsel %vm358_vm0, %v1502_v58, 0.0 }
 0x3d0   : > { %v1533_v1 = vadd.f32 %v1532_v18, %v1531_v14  ;;  %p2347_p13 = pneg %p2346_p12 }
 0x3d2   : > { %1534 = vadd.xlane.f32.xlu1 %v1533_v1  ;;  %p2352_p3 = pnand %p2351_p2, %p2347_p13 }
 0x3d4   : > { %2355 = shalt.err (!%p2352_p3)
}
 0x3d5   : > { %2122 = dma.vmem_to_hbm [thread:$0]  (%p2499_p5), %s1809_s19, 32, %s1811_s20, %s1784_s26   ;;  %vm1765_vm0 = vcmp.eq.s32.totalorder %v2743_v9, 0  ;;  %vm1768_vm12 = vcmp.eq.s32.totalorder %v2743_v9, 1 }
 0x3d6   : > { %s1819_s16 = scalar_lea.hbm %s3804_s6, %s2482_s25  ;;  %s285_s19 = scalar_lea.vmem [#allocation4], %s3586_s12 }
 0x3d7   : > { %s1821_s20 = sshll.u32 %s285_s19, 4  ;;  %s1823_s26 = sshll.u32 %s1819_s16, 4  ;;  %s1822_s20 = int_to_ptr.vmem [resolvable:$true] %s1821_s20  ;;  %s1824_s26 = int_to_ptr.hbm [resolvable:$true] %s1823_s26 }
 0x3d8   : > { %s1789_s25 = scalar_lea.sflag [#allocation5], %s3586_s12  ;;  %s2370_s28 = sshra.s32 %s1824_s26, 4  ;;  %s2371_s28 = int_to_ptr.hbm [resolvable:$true] %s2370_s28 }
 0x3d9   : > { %s2372_s29 = scalar_lea.hbm %s2371_s28, 1  ;;  %s2376_s11 = scalar_lea.hbm %s3804_s6, 4 }
 0x3da   : > { %p2373_p4 = scmp.ne.s32.totalorder %s2371_s28, %s2372_s29  ;;  %p2377_p9 = scmp.lt.s32.totalorder %s2371_s28, %s3804_s6 }
 0x3db   : > { %p2378_p10 = scmp.lt.s32.totalorder %s2376_s11, %s2372_s29 }
 0x3dc   : > { %p2374_p7 = pnand %p2373_p4, %p2499_p5 }
 0x3dd   : > { %p2379_p11 = por %p2378_p10, %p2377_p9 }
 0x3de   : > { %p2375_p8 = pneg %p2374_p7 }
 0x3e0   : > { %p2380_p12 = pnand %p2379_p11, %p2375_p8 }
 0x409   : > { %v1703_v7 = vpop.xlane.xlu2 %1702 }
 0x40a   : > { %v1704_v11 = vrot.slane %v1703_v7, 4 }
 0x40c   : > { %v1705_v35 = vadd.f32 %v1704_v11, %v1703_v7 }
 0x40e   : > { %v1706_v49 = vrot.slane %v1705_v35, 2 }
 0x410   : > { %v1707_v37 = vadd.f32 %v1706_v49, %v1705_v35 }
 0x412   : > { %v1708_v45 = vrot.slane %v1707_v37, 1 }
 0x414   : > { %v1709_v53 = vadd.f32 %v1708_v45, %v1707_v37 }
 0x445   : > { %v1535_v4 = vpop.xlane.xlu1 %1534 }
 0x446   : > { %v1536_v16 = vrot.slane %v1535_v4, 4 }
 0x448   : > { %v1537_v25 = vadd.f32 %v1536_v16, %v1535_v4 }
 0x44a   : > { %v1538_v59 = vrot.slane %v1537_v25, 2 }
 0x44c   : > { %v1539_v60 = vadd.f32 %v1538_v59, %v1537_v25 }
 0x44e   : > { %v1540_v47 = vrot.slane %v1539_v60, 1 }
 0x450   : > { %v1541_v43 = vadd.f32 %v1540_v47, %v1539_v60 }
 0x452   : > { %2118 = vpush %v1541_v43 }
 0x453   : > { %2120 = vpush %v1709_v53 }
 0x483   : > { %s2119_s0 = spop %2118 }
 0x484   : > { %s2121_s17 = spop %2120  ;;  %v1766_v62 = vstv %s2119_s0 }
 0x485   : > { %s1711_s18 = ssub.f32 0.0, %s2121_s17  ;;  %v1767_v21 = vsel %vm1765_vm0, %v1766_v62, 0.0 }
 0x487   : > { %v1769_v22 = vstv %s1711_s18 }
 0x488   : > { %v1770_v8 = vsel %vm1768_vm12, %v1769_v22, 0.0 }
 0x489   : > { %v1771_v3 = vadd.f32 %v1770_v8, %v1767_v21 }
 0x48b   : > { %1772 = vst [vmem:[%s285_s19] sm:$0x1] %v1771_v3 }
 0x48c   : > { %2383 = shalt.err (!%p2380_p12)
}
 0x48d   : > { %2123 = dma.vmem_to_hbm [thread:$0]  (%p2499_p5), %s1822_s20, 16, %s1824_s26, %s1789_s25  }
 0x48e PF: > { %p2133_p13 = scmp.ge.s32.totalorder %s2422_s24, 2  ;;  %s1851_s12 = sand.u32 1, %s2410_s21  }
 0x48f   : > { %s1852_s14 = scalar_lea.sflag [#allocation3], %s1851_s12 }
 0x490   : > { %p2127_p0 = pnand %p2133_p13, %p2503_p6 }
 0x492   : > { %p2128_p1 = pneg %p2127_p0 }
 0x494   : > { %2401 = dma.done.wait (%p2128_p1), %s1852_s14, 32  }
 0x495   : > { %2403 = vsyncadd (%p2128_p1), %s1852_s14, 4294967264  ;;  %s1862_s15 = scalar_lea.sflag [#allocation5], %s1851_s12 }
 0x496   : > { %2405 = dma.done.wait (%p2128_p1), %s1862_s15, 16  }
 0x497   : > { %2407 = vsyncadd (%p2128_p1), %s1862_s15, 4294967280  ;;  %p20_p5 = scmp.ge.s32.totalorder %s2486_s27, 6   ;;  %s3895_s21 = smov %s2414_s22 }
 0x498   : > { %s3896_s22 = smov %s2418_s23  ;;  %s3897_s23 = smov %s2497_s30 }
 0x499   : > { %s3898_s24 = smov %s2486_s27  ;;  %22 = sbr.rel (!%p20_p5) target bundleno = 7 (0x7), region = 111 }
 0x49e   :  { %1867 = vsyncpa [#allocation3], 1 }
 0x49f   :  { %1869 = vsyncpa [#allocation3 + $0x1], 1 }
 0x4a0   :  { %1870 = vsyncpa [#allocation5], 1 }
 0x4a1   :  { %1872 = vsyncpa [#allocation5 + $0x1], 1 }

</bundles_post_ra>
